<compile_context>
chip_gen: v7x
topology: tpu7x:2x2x1
jax: 0.10.0
libtpu: 0.0.40
codegen_flags: <defaults>
</compile_context>

<pallas_src>
import math

import jax
import jax.numpy as jnp
from jax.experimental import pallas as pl
from jax.experimental.pallas import tpu as pltpu

# ---------------- small synthetic BERT config ----------------
VOCAB = 128
MAX_POS = 64
TYPE_VOCAB = 2
HIDDEN = 32
N_LAYERS = 2
N_HEADS = 2
HEAD_DIM = HIDDEN // N_HEADS
INTERMEDIATE = 64
NUM_TAGS = 5
PAD_TAGS = 128          # lane-dense classifier output width (sliced to NUM_TAGS outside)
LN_EPS = 1e-12
INIT_RANGE = 0.02       # config.initializer_range


# ---------------- in-kernel helpers (trace into the fused kernel) ----------------
def _ln(x, g, b):
    """LayerNorm over the last (lane) axis; matches torch.nn.LayerNorm (biased var)."""
    mu = jnp.mean(x, axis=-1, keepdims=True)
    xc = x - mu
    var = jnp.mean(xc * xc, axis=-1, keepdims=True)
    return xc * jax.lax.rsqrt(var + LN_EPS) * g + b


def _gelu(y):
    # TODO(synk): HF BERT uses erf-based GELU; tanh approximation used here
    # (erf lowering in Mosaic is not guaranteed; max abs diff ~1e-3).
    return 0.5 * y * (1.0 + jnp.tanh(0.7978845608028654 * (y + 0.044715 * y * y * y)))


# ---------------- the single fused kernel ----------------
def _bert_fused_kernel(emb_ref, bias_ref,
                       emb_ln_g_ref, emb_ln_b_ref,
                       qkv_wt_ref, qkv_b_ref,
                       o_wt_ref, o_b_ref,
                       attn_ln_g_ref, attn_ln_b_ref,
                       i_wt_ref, i_b_ref,
                       f_wt_ref, f_b_ref,
                       ffn_ln_g_ref, ffn_ln_b_ref,
                       cls_wt_ref, cls_b_ref,
                       out_ref):
    """One batch element per grid step; weights + activations stay VMEM-resident."""
    scale = 1.0 / math.sqrt(HEAD_DIM)
    bias = bias_ref[0]                                            # [1, S] additive mask

    # Embedding LayerNorm (embedding dropout: eval mode => identity).
    x = _ln(emb_ref[0], emb_ln_g_ref[...], emb_ln_b_ref[...])     # [S, H]

    # NOTE: at real BERT sizes (H=768+), cast matmul inputs to bf16 (keep f32
    # accumulation) and tile the dense path; at HIDDEN=32 f32 whole-block is fine.
    for l in range(N_LAYERS):
        # ---------------- self-attention ----------------
        qkv = jnp.dot(x, qkv_wt_ref[l],
                      preferred_element_type=jnp.float32) + qkv_b_ref[l]   # [S, 3H]
        ctx_heads = []
        for h in range(N_HEADS):
            lo = h * HEAD_DIM
            q_h = qkv[:, lo:lo + HEAD_DIM]                                  # [S, Dh]
            k_h = qkv[:, HIDDEN + lo:HIDDEN + lo + HEAD_DIM]                # [S, Dh]
            v_h = qkv[:, 2 * HIDDEN + lo:2 * HIDDEN + lo + HEAD_DIM]        # [S, Dh]
            # q @ k^T via dot_general contracting on the feature dim (no transpose op).
            scores = jax.lax.dot_general(
                q_h, k_h, (((1,), (1,)), ((), ())),
                preferred_element_type=jnp.float32)                         # [S, S]
            scores = scores * scale + bias
            m = jnp.max(scores, axis=-1, keepdims=True)
            e = jnp.exp(scores - m)
            p = e * pl.reciprocal(jnp.sum(e, axis=-1, keepdims=True), approx=True)
            ctx_heads.append(jnp.dot(p, v_h, preferred_element_type=jnp.float32))
        ctx = jnp.concatenate(ctx_heads, axis=-1)                           # [S, H]

        attn_out = jnp.dot(ctx, o_wt_ref[l],
                           preferred_element_type=jnp.float32) + o_b_ref[l]
        # attention-output dropout: eval mode => identity
        x = _ln(attn_out + x, attn_ln_g_ref[l], attn_ln_b_ref[l])

        # ---------------- feed-forward ----------------
        inter = _gelu(jnp.dot(x, i_wt_ref[l],
                              preferred_element_type=jnp.float32) + i_b_ref[l])
        ffn_out = jnp.dot(inter, f_wt_ref[l],
                          preferred_element_type=jnp.float32) + f_b_ref[l]
        # FFN-output dropout: eval mode => identity
        x = _ln(ffn_out + x, ffn_ln_g_ref[l], ffn_ln_b_ref[l])

    # ---------------- token classifier ----------------
    # dropout_ner: eval mode => identity.  cls weight is padded to 128 lanes so
    # this store is lane-dense (unmasked vst); wrapper slices [:, :NUM_TAGS].
    logits = jnp.dot(x, cls_wt_ref[...],
                     preferred_element_type=jnp.float32) + cls_b_ref[...]   # [S, 128]
    out_ref[0] = logits.astype(out_ref.dtype)


# ---------------- parameters (deterministic, synthetic) ----------------
def init_params(key):
    """PyTorch-layout parameters ([out_features, in_features] Linear weights)."""
    def normal(k, shape):
        return (INIT_RANGE * jax.random.normal(k, shape)).astype(jnp.float32)

    keys = jax.random.split(key, 4 + N_LAYERS)
    params = {
        "word_emb": normal(keys[0], (VOCAB, HIDDEN)),
        "pos_emb": normal(keys[1], (MAX_POS, HIDDEN)),
        "type_emb": normal(keys[2], (TYPE_VOCAB, HIDDEN)),
        "emb_ln_g": jnp.ones((HIDDEN,), jnp.float32),
        "emb_ln_b": jnp.zeros((HIDDEN,), jnp.float32),
        # classifier_ner: weight ~ N(0, initializer_range), bias zero
        "cls_w": normal(keys[3], (NUM_TAGS, HIDDEN)),
        "cls_b": jnp.zeros((NUM_TAGS,), jnp.float32),
        "layers": [],
    }
    for l in range(N_LAYERS):
        lk = jax.random.split(keys[4 + l], 6)
        params["layers"].append({
            "q_w": normal(lk[0], (HIDDEN, HIDDEN)), "q_b": jnp.zeros((HIDDEN,), jnp.float32),
            "k_w": normal(lk[1], (HIDDEN, HIDDEN)), "k_b": jnp.zeros((HIDDEN,), jnp.float32),
            "v_w": normal(lk[2], (HIDDEN, HIDDEN)), "v_b": jnp.zeros((HIDDEN,), jnp.float32),
            "o_w": normal(lk[3], (HIDDEN, HIDDEN)), "o_b": jnp.zeros((HIDDEN,), jnp.float32),
            "attn_ln_g": jnp.ones((HIDDEN,), jnp.float32),
            "attn_ln_b": jnp.zeros((HIDDEN,), jnp.float32),
            "i_w": normal(lk[4], (INTERMEDIATE, HIDDEN)), "i_b": jnp.zeros((INTERMEDIATE,), jnp.float32),
            "f_w": normal(lk[5], (HIDDEN, INTERMEDIATE)), "f_b": jnp.zeros((HIDDEN,), jnp.float32),
            "ffn_ln_g": jnp.ones((HIDDEN,), jnp.float32),
            "ffn_ln_b": jnp.zeros((HIDDEN,), jnp.float32),
        })
    return params


def pack_params(p):
    """ONE-TIME repack for the fused kernel: transpose W -> W^T, concat QKV,
    stack per-layer tensors along a leading layer axis, zero-pad the classifier
    to 128 output lanes.  Done once at init, never per forward."""
    L = p["layers"]
    return {
        "word_emb": p["word_emb"],
        "pos_emb": p["pos_emb"],
        "type_emb": p["type_emb"],
        "emb_ln_g": p["emb_ln_g"].reshape(1, HIDDEN),
        "emb_ln_b": p["emb_ln_b"].reshape(1, HIDDEN),
        # [L, H, 3H]:  x @ qkv_wt == [x@Wq^T | x@Wk^T | x@Wv^T]
        "qkv_wt": jnp.stack([jnp.concatenate([l["q_w"], l["k_w"], l["v_w"]], 0).T for l in L]),
        "qkv_b": jnp.stack([jnp.concatenate([l["q_b"], l["k_b"], l["v_b"]])[None, :] for l in L]),
        "o_wt": jnp.stack([l["o_w"].T for l in L]),                    # [L, H, H]
        "o_b": jnp.stack([l["o_b"][None, :] for l in L]),              # [L, 1, H]
        "attn_ln_g": jnp.stack([l["attn_ln_g"][None, :] for l in L]),
        "attn_ln_b": jnp.stack([l["attn_ln_b"][None, :] for l in L]),
        "i_wt": jnp.stack([l["i_w"].T for l in L]),                    # [L, H, I]
        "i_b": jnp.stack([l["i_b"][None, :] for l in L]),              # [L, 1, I]
        "f_wt": jnp.stack([l["f_w"].T for l in L]),                    # [L, I, H]
        "f_b": jnp.stack([l["f_b"][None, :] for l in L]),              # [L, 1, H]
        "ffn_ln_g": jnp.stack([l["ffn_ln_g"][None, :] for l in L]),
        "ffn_ln_b": jnp.stack([l["ffn_ln_b"][None, :] for l in L]),
        # lane-dense classifier: zero-pad output dim to 128
        "cls_wt": jnp.zeros((HIDDEN, PAD_TAGS), jnp.float32).at[:, :NUM_TAGS].set(p["cls_w"].T),
        "cls_b": jnp.zeros((1, PAD_TAGS), jnp.float32).at[0, :NUM_TAGS].set(p["cls_b"]),
    }


# ---------------- forward (glue = embedding gathers only) ----------------
_WEIGHT_NAMES = ["emb_ln_g", "emb_ln_b", "qkv_wt", "qkv_b", "o_wt", "o_b",
                 "attn_ln_g", "attn_ln_b", "i_wt", "i_b", "f_wt", "f_b",
                 "ffn_ln_g", "ffn_ln_b", "cls_wt", "cls_b"]


def _full_spec(shape):
    n = len(shape)
    return pl.BlockSpec(shape, lambda b, _n=n: (0,) * _n)


def forward(packed, input_ids, attention_mask, token_type_ids=None):
    B, S = input_ids.shape
    if token_type_ids is None:
        token_type_ids = jnp.zeros((B, S), jnp.int32)

    # Embedding gathers are data-dependent lookups -> JAX glue; LN runs in-kernel.
    pos_ids = jnp.arange(S)
    emb = (packed["word_emb"][input_ids]
           + packed["pos_emb"][pos_ids][None, :, :]
           + packed["type_emb"][token_type_ids]).astype(jnp.float32)       # [B, S, H]
    attn_bias = ((1.0 - attention_mask.astype(jnp.float32)) * -10000.0).reshape(B, 1, S)

    weights = [packed[n] for n in _WEIGHT_NAMES]
    in_specs = ([pl.BlockSpec((1, S, HIDDEN), lambda b: (b, 0, 0)),
                 pl.BlockSpec((1, 1, S), lambda b: (b, 0, 0))]
                + [_full_spec(w.shape) for w in weights])

    logits_pad = pl.pallas_call(
        _bert_fused_kernel,
        grid=(B,),                                      # batch-parallel: 2 TCs on v7x
        in_specs=in_specs,
        out_specs=pl.BlockSpec((1, S, PAD_TAGS), lambda b: (b, 0, 0)),
        out_shape=jax.ShapeDtypeStruct((B, S, PAD_TAGS), jnp.float32),
        compiler_params=pltpu.CompilerParams(dimension_semantics=("parallel",)),
    )(emb, attn_bias, *weights)

    logits_ner = logits_pad[:, :, :NUM_TAGS]
    # outputs = (logits_ner,) + outputs[2:]  -> outputs[2:] empty for default config
    return (logits_ner,)


if __name__ == "__main__":
    key = jax.random.PRNGKey(0)
    pkey, ikey = jax.random.split(key)
    params = init_params(pkey)
    packed = pack_params(params)        # one-time weight repack (transpose/concat/pad)

    B, S = 2, 8
    input_ids = jax.random.randint(ikey, (B, S), 0, VOCAB, dtype=jnp.int32)
    attention_mask = jnp.array([[1, 1, 1, 1, 1, 1, 1, 1],
                                [1, 1, 1, 1, 1, 1, 0, 0]], dtype=jnp.int32)
    token_type_ids = jnp.zeros((B, S), dtype=jnp.int32)

    (logits,) = jax.jit(forward)(packed, input_ids, attention_mask, token_type_ids)
    logits = jax.block_until_ready(logits)
    assert logits.shape == (B, S, NUM_TAGS)
    assert logits.dtype == jnp.float32
    assert bool(jnp.all(jnp.isfinite(logits)))
    print("KERNEL_OK")
</pallas_src>

<mosaic_0001>
module attributes {stable_mosaic.version = 11 : i64} {
  func.func @_bert_fused_kernel(%arg0: i32, %arg1: memref<1x8x32xf32, #tpu.memory_space<vmem>>, %arg2: memref<1x1x8xf32, #tpu.memory_space<vmem>>, %arg3: memref<1x32xf32, #tpu.memory_space<vmem>>, %arg4: memref<1x32xf32, #tpu.memory_space<vmem>>, %arg5: memref<2x32x96xf32, #tpu.memory_space<vmem>>, %arg6: memref<2x1x96xf32, #tpu.memory_space<vmem>>, %arg7: memref<2x32x32xf32, #tpu.memory_space<vmem>>, %arg8: memref<2x1x32xf32, #tpu.memory_space<vmem>>, %arg9: memref<2x1x32xf32, #tpu.memory_space<vmem>>, %arg10: memref<2x1x32xf32, #tpu.memory_space<vmem>>, %arg11: memref<2x32x64xf32, #tpu.memory_space<vmem>>, %arg12: memref<2x1x64xf32, #tpu.memory_space<vmem>>, %arg13: memref<2x64x32xf32, #tpu.memory_space<vmem>>, %arg14: memref<2x1x32xf32, #tpu.memory_space<vmem>>, %arg15: memref<2x1x32xf32, #tpu.memory_space<vmem>>, %arg16: memref<2x1x32xf32, #tpu.memory_space<vmem>>, %arg17: memref<32x128xf32, #tpu.memory_space<vmem>>, %arg18: memref<1x128xf32, #tpu.memory_space<vmem>>, %arg19: memref<1x8x128xf32, #tpu.memory_space<vmem>>) attributes {dimension_semantics = [#tpu.dimension_semantics<parallel>], iteration_bounds = array<i64: 2>, scalar_prefetch = 0 : i64, scratch_operands = 0 : i64, tpu.core_type = #tpu.core_type<tc>, window_params = [{transform_indices = @transform_0, window_bounds = array<i64: 1, 8, 32>}, {transform_indices = @transform_1, window_bounds = array<i64: 1, 1, 8>}, {pipeline_mode = #tpu.pipeline_mode<synchronous>, transform_indices = @transform_2, window_bounds = array<i64: 1, 32>}, {pipeline_mode = #tpu.pipeline_mode<synchronous>, transform_indices = @transform_3, window_bounds = array<i64: 1, 32>}, {pipeline_mode = #tpu.pipeline_mode<synchronous>, transform_indices = @transform_4, window_bounds = array<i64: 2, 32, 96>}, {pipeline_mode = #tpu.pipeline_mode<synchronous>, transform_indices = @transform_5, window_bounds = array<i64: 2, 1, 96>}, {pipeline_mode = #tpu.pipeline_mode<synchronous>, transform_indices = @transform_6, window_bounds = array<i64: 2, 32, 32>}, {pipeline_mode = #tpu.pipeline_mode<synchronous>, transform_indices = @transform_7, window_bounds = array<i64: 2, 1, 32>}, {pipeline_mode = #tpu.pipeline_mode<synchronous>, transform_indices = @transform_8, window_bounds = array<i64: 2, 1, 32>}, {pipeline_mode = #tpu.pipeline_mode<synchronous>, transform_indices = @transform_9, window_bounds = array<i64: 2, 1, 32>}, {pipeline_mode = #tpu.pipeline_mode<synchronous>, transform_indices = @transform_10, window_bounds = array<i64: 2, 32, 64>}, {pipeline_mode = #tpu.pipeline_mode<synchronous>, transform_indices = @transform_11, window_bounds = array<i64: 2, 1, 64>}, {pipeline_mode = #tpu.pipeline_mode<synchronous>, transform_indices = @transform_12, window_bounds = array<i64: 2, 64, 32>}, {pipeline_mode = #tpu.pipeline_mode<synchronous>, transform_indices = @transform_13, window_bounds = array<i64: 2, 1, 32>}, {pipeline_mode = #tpu.pipeline_mode<synchronous>, transform_indices = @transform_14, window_bounds = array<i64: 2, 1, 32>}, {pipeline_mode = #tpu.pipeline_mode<synchronous>, transform_indices = @transform_15, window_bounds = array<i64: 2, 1, 32>}, {pipeline_mode = #tpu.pipeline_mode<synchronous>, transform_indices = @transform_16, window_bounds = array<i64: 32, 128>}, {pipeline_mode = #tpu.pipeline_mode<synchronous>, transform_indices = @transform_17, window_bounds = array<i64: 1, 128>}, {transform_indices = @transform_18, window_bounds = array<i64: 1, 8, 128>}]} {
    %c0 = arith.constant 0 : index
    %c0_0 = arith.constant 0 : index
    %c0_1 = arith.constant 0 : index
    %0 = vector.load %arg2[%c0, %c0_0, %c0_1] : memref<1x1x8xf32, #tpu.memory_space<vmem>>, vector<1x1x8xf32>
    %1 = vector.shape_cast %0 : vector<1x1x8xf32> to vector<1x8xf32>
    %c0_2 = arith.constant 0 : index
    %c0_3 = arith.constant 0 : index
    %c0_4 = arith.constant 0 : index
    %2 = vector.load %arg1[%c0_2, %c0_3, %c0_4] : memref<1x8x32xf32, #tpu.memory_space<vmem>>, vector<1x8x32xf32>
    %3 = vector.shape_cast %2 : vector<1x8x32xf32> to vector<8x32xf32>
    %c0_5 = arith.constant 0 : index
    %c0_6 = arith.constant 0 : index
    %4 = vector.load %arg3[%c0_5, %c0_6] : memref<1x32xf32, #tpu.memory_space<vmem>>, vector<1x32xf32>
    %c0_7 = arith.constant 0 : index
    %c0_8 = arith.constant 0 : index
    %5 = vector.load %arg4[%c0_7, %c0_8] : memref<1x32xf32, #tpu.memory_space<vmem>>, vector<1x32xf32>
    %cst = arith.constant dense<0.000000e+00> : vector<8xf32>
    %6 = vector.multi_reduction <add>, %3, %cst [1] : vector<8x32xf32> to vector<8xf32>
    %7 = vector.shape_cast %6 : vector<8xf32> to vector<8x1xf32>
    %cst_9 = arith.constant 3.200000e+01 : f32
    %8 = vector.broadcast %cst_9 : f32 to vector<8x1xf32>
    %9 = arith.divf %7, %8 : vector<8x1xf32>
    %10 = vector.broadcast %9 : vector<8x1xf32> to vector<8x32xf32>
    %11 = arith.subf %3, %10 : vector<8x32xf32>
    %12 = arith.mulf %11, %11 : vector<8x32xf32>
    %cst_10 = arith.constant dense<0.000000e+00> : vector<8xf32>
    %13 = vector.multi_reduction <add>, %12, %cst_10 [1] : vector<8x32xf32> to vector<8xf32>
    %14 = vector.shape_cast %13 : vector<8xf32> to vector<8x1xf32>
    %cst_11 = arith.constant 3.200000e+01 : f32
    %15 = vector.broadcast %cst_11 : f32 to vector<8x1xf32>
    %16 = arith.divf %14, %15 : vector<8x1xf32>
    %cst_12 = arith.constant 9.99999996E-13 : f32
    %17 = vector.broadcast %cst_12 : f32 to vector<8x1xf32>
    %18 = arith.addf %16, %17 : vector<8x1xf32>
    %19 = math.rsqrt %18 : vector<8x1xf32>
    %20 = vector.broadcast %19 : vector<8x1xf32> to vector<8x32xf32>
    %21 = arith.mulf %11, %20 : vector<8x32xf32>
    %22 = vector.broadcast %4 : vector<1x32xf32> to vector<8x32xf32>
    %23 = arith.mulf %21, %22 : vector<8x32xf32>
    %24 = vector.broadcast %5 : vector<1x32xf32> to vector<8x32xf32>
    %25 = arith.addf %23, %24 : vector<8x32xf32>
    %c0_13 = arith.constant 0 : index
    %c0_14 = arith.constant 0 : index
    %c0_15 = arith.constant 0 : index
    %26 = vector.load %arg5[%c0_13, %c0_14, %c0_15] : memref<2x32x96xf32, #tpu.memory_space<vmem>>, vector<1x32x96xf32>
    %27 = vector.shape_cast %26 : vector<1x32x96xf32> to vector<32x96xf32>
    %cst_16 = arith.constant dense<0.000000e+00> : vector<8x96xf32>
    %28 = tpu.matmul %25, %27, %cst_16 {dimension_numbers = #tpu.dot_dimension_numbers<[1], [0], [0], [1], [0, 0, 1, 1], [], []>} : vector<8x32xf32>, vector<32x96xf32>, vector<8x96xf32> -> vector<8x96xf32>
    %c0_17 = arith.constant 0 : index
    %c0_18 = arith.constant 0 : index
    %c0_19 = arith.constant 0 : index
    %29 = vector.load %arg6[%c0_17, %c0_18, %c0_19] : memref<2x1x96xf32, #tpu.memory_space<vmem>>, vector<1x1x96xf32>
    %30 = vector.shape_cast %29 : vector<1x1x96xf32> to vector<1x96xf32>
    %31 = vector.broadcast %30 : vector<1x96xf32> to vector<8x96xf32>
    %32 = arith.addf %28, %31 : vector<8x96xf32>
    %33 = vector.extract_strided_slice %32 {offsets = [0, 0], sizes = [8, 16], strides = [1, 1]} : vector<8x96xf32> to vector<8x16xf32>
    %34 = vector.extract_strided_slice %32 {offsets = [0, 32], sizes = [8, 16], strides = [1, 1]} : vector<8x96xf32> to vector<8x16xf32>
    %35 = vector.extract_strided_slice %32 {offsets = [0, 64], sizes = [8, 16], strides = [1, 1]} : vector<8x96xf32> to vector<8x16xf32>
    %cst_20 = arith.constant dense<0.000000e+00> : vector<8x8xf32>
    %36 = tpu.matmul %33, %34, %cst_20 {dimension_numbers = #tpu.dot_dimension_numbers<[1], [1], [0], [0], [0, 0, 1, 0], [], []>} : vector<8x16xf32>, vector<8x16xf32>, vector<8x8xf32> -> vector<8x8xf32>
    %cst_21 = arith.constant 2.500000e-01 : f32
    %37 = vector.broadcast %cst_21 : f32 to vector<8x8xf32>
    %38 = arith.mulf %36, %37 : vector<8x8xf32>
    %39 = vector.broadcast %1 : vector<1x8xf32> to vector<8x8xf32>
    %40 = arith.addf %38, %39 : vector<8x8xf32>
    %cst_22 = arith.constant dense<0xFF800000> : vector<8xf32>
    %41 = vector.multi_reduction <maximumf>, %40, %cst_22 [1] : vector<8x8xf32> to vector<8xf32>
    %42 = vector.shape_cast %41 : vector<8xf32> to vector<8x1xf32>
    %43 = vector.broadcast %42 : vector<8x1xf32> to vector<8x8xf32>
    %44 = arith.subf %40, %43 : vector<8x8xf32>
    %45 = math.exp %44 : vector<8x8xf32>
    %cst_23 = arith.constant dense<0.000000e+00> : vector<8xf32>
    %46 = vector.multi_reduction <add>, %45, %cst_23 [1] : vector<8x8xf32> to vector<8xf32>
    %47 = vector.shape_cast %46 : vector<8xf32> to vector<8x1xf32>
    %48 = tpu.reciprocal %47 {approx = true} : vector<8x1xf32> -> vector<8x1xf32>
    %49 = vector.broadcast %48 : vector<8x1xf32> to vector<8x8xf32>
    %50 = arith.mulf %45, %49 : vector<8x8xf32>
    %cst_24 = arith.constant dense<0.000000e+00> : vector<8x16xf32>
    %51 = tpu.matmul %50, %35, %cst_24 {dimension_numbers = #tpu.dot_dimension_numbers<[1], [0], [0], [1], [0, 0, 1, 1], [], []>} : vector<8x8xf32>, vector<8x16xf32>, vector<8x16xf32> -> vector<8x16xf32>
    %52 = vector.extract_strided_slice %32 {offsets = [0, 16], sizes = [8, 16], strides = [1, 1]} : vector<8x96xf32> to vector<8x16xf32>
    %53 = vector.extract_strided_slice %32 {offsets = [0, 48], sizes = [8, 16], strides = [1, 1]} : vector<8x96xf32> to vector<8x16xf32>
    %54 = vector.extract_strided_slice %32 {offsets = [0, 80], sizes = [8, 16], strides = [1, 1]} : vector<8x96xf32> to vector<8x16xf32>
    %cst_25 = arith.constant dense<0.000000e+00> : vector<8x8xf32>
    %55 = tpu.matmul %52, %53, %cst_25 {dimension_numbers = #tpu.dot_dimension_numbers<[1], [1], [0], [0], [0, 0, 1, 0], [], []>} : vector<8x16xf32>, vector<8x16xf32>, vector<8x8xf32> -> vector<8x8xf32>
    %cst_26 = arith.constant 2.500000e-01 : f32
    %56 = vector.broadcast %cst_26 : f32 to vector<8x8xf32>
    %57 = arith.mulf %55, %56 : vector<8x8xf32>
    %58 = vector.broadcast %1 : vector<1x8xf32> to vector<8x8xf32>
    %59 = arith.addf %57, %58 : vector<8x8xf32>
    %cst_27 = arith.constant dense<0xFF800000> : vector<8xf32>
    %60 = vector.multi_reduction <maximumf>, %59, %cst_27 [1] : vector<8x8xf32> to vector<8xf32>
    %61 = vector.shape_cast %60 : vector<8xf32> to vector<8x1xf32>
    %62 = vector.broadcast %61 : vector<8x1xf32> to vector<8x8xf32>
    %63 = arith.subf %59, %62 : vector<8x8xf32>
    %64 = math.exp %63 : vector<8x8xf32>
    %cst_28 = arith.constant dense<0.000000e+00> : vector<8xf32>
    %65 = vector.multi_reduction <add>, %64, %cst_28 [1] : vector<8x8xf32> to vector<8xf32>
    %66 = vector.shape_cast %65 : vector<8xf32> to vector<8x1xf32>
    %67 = tpu.reciprocal %66 {approx = true} : vector<8x1xf32> -> vector<8x1xf32>
    %68 = vector.broadcast %67 : vector<8x1xf32> to vector<8x8xf32>
    %69 = arith.mulf %64, %68 : vector<8x8xf32>
    %cst_29 = arith.constant dense<0.000000e+00> : vector<8x16xf32>
    %70 = tpu.matmul %69, %54, %cst_29 {dimension_numbers = #tpu.dot_dimension_numbers<[1], [0], [0], [1], [0, 0, 1, 1], [], []>} : vector<8x8xf32>, vector<8x16xf32>, vector<8x16xf32> -> vector<8x16xf32>
    %71 = tpu.concatenate %51, %70 in 1 : vector<8x16xf32>, vector<8x16xf32> -> vector<8x32xf32>
    %c0_30 = arith.constant 0 : index
    %c0_31 = arith.constant 0 : index
    %c0_32 = arith.constant 0 : index
    %72 = vector.load %arg7[%c0_30, %c0_31, %c0_32] : memref<2x32x32xf32, #tpu.memory_space<vmem>>, vector<1x32x32xf32>
    %73 = vector.shape_cast %72 : vector<1x32x32xf32> to vector<32x32xf32>
    %cst_33 = arith.constant dense<0.000000e+00> : vector<8x32xf32>
    %74 = tpu.matmul %71, %73, %cst_33 {dimension_numbers = #tpu.dot_dimension_numbers<[1], [0], [0], [1], [0, 0, 1, 1], [], []>} : vector<8x32xf32>, vector<32x32xf32>, vector<8x32xf32> -> vector<8x32xf32>
    %c0_34 = arith.constant 0 : index
    %c0_35 = arith.constant 0 : index
    %c0_36 = arith.constant 0 : index
    %75 = vector.load %arg8[%c0_34, %c0_35, %c0_36] : memref<2x1x32xf32, #tpu.memory_space<vmem>>, vector<1x1x32xf32>
    %76 = vector.shape_cast %75 : vector<1x1x32xf32> to vector<1x32xf32>
    %77 = vector.broadcast %76 : vector<1x32xf32> to vector<8x32xf32>
    %78 = arith.addf %74, %77 : vector<8x32xf32>
    %79 = arith.addf %78, %25 : vector<8x32xf32>
    %c0_37 = arith.constant 0 : index
    %c0_38 = arith.constant 0 : index
    %c0_39 = arith.constant 0 : index
    %80 = vector.load %arg9[%c0_37, %c0_38, %c0_39] : memref<2x1x32xf32, #tpu.memory_space<vmem>>, vector<1x1x32xf32>
    %81 = vector.shape_cast %80 : vector<1x1x32xf32> to vector<1x32xf32>
    %c0_40 = arith.constant 0 : index
    %c0_41 = arith.constant 0 : index
    %c0_42 = arith.constant 0 : index
    %82 = vector.load %arg10[%c0_40, %c0_41, %c0_42] : memref<2x1x32xf32, #tpu.memory_space<vmem>>, vector<1x1x32xf32>
    %83 = vector.shape_cast %82 : vector<1x1x32xf32> to vector<1x32xf32>
    %cst_43 = arith.constant dense<0.000000e+00> : vector<8xf32>
    %84 = vector.multi_reduction <add>, %79, %cst_43 [1] : vector<8x32xf32> to vector<8xf32>
    %85 = vector.shape_cast %84 : vector<8xf32> to vector<8x1xf32>
    %cst_44 = arith.constant 3.200000e+01 : f32
    %86 = vector.broadcast %cst_44 : f32 to vector<8x1xf32>
    %87 = arith.divf %85, %86 : vector<8x1xf32>
    %88 = vector.broadcast %87 : vector<8x1xf32> to vector<8x32xf32>
    %89 = arith.subf %79, %88 : vector<8x32xf32>
    %90 = arith.mulf %89, %89 : vector<8x32xf32>
    %cst_45 = arith.constant dense<0.000000e+00> : vector<8xf32>
    %91 = vector.multi_reduction <add>, %90, %cst_45 [1] : vector<8x32xf32> to vector<8xf32>
    %92 = vector.shape_cast %91 : vector<8xf32> to vector<8x1xf32>
    %cst_46 = arith.constant 3.200000e+01 : f32
    %93 = vector.broadcast %cst_46 : f32 to vector<8x1xf32>
    %94 = arith.divf %92, %93 : vector<8x1xf32>
    %cst_47 = arith.constant 9.99999996E-13 : f32
    %95 = vector.broadcast %cst_47 : f32 to vector<8x1xf32>
    %96 = arith.addf %94, %95 : vector<8x1xf32>
    %97 = math.rsqrt %96 : vector<8x1xf32>
    %98 = vector.broadcast %97 : vector<8x1xf32> to vector<8x32xf32>
    %99 = arith.mulf %89, %98 : vector<8x32xf32>
    %100 = vector.broadcast %81 : vector<1x32xf32> to vector<8x32xf32>
    %101 = arith.mulf %99, %100 : vector<8x32xf32>
    %102 = vector.broadcast %83 : vector<1x32xf32> to vector<8x32xf32>
    %103 = arith.addf %101, %102 : vector<8x32xf32>
    %c0_48 = arith.constant 0 : index
    %c0_49 = arith.constant 0 : index
    %c0_50 = arith.constant 0 : index
    %104 = vector.load %arg11[%c0_48, %c0_49, %c0_50] : memref<2x32x64xf32, #tpu.memory_space<vmem>>, vector<1x32x64xf32>
    %105 = vector.shape_cast %104 : vector<1x32x64xf32> to vector<32x64xf32>
    %cst_51 = arith.constant dense<0.000000e+00> : vector<8x64xf32>
    %106 = tpu.matmul %103, %105, %cst_51 {dimension_numbers = #tpu.dot_dimension_numbers<[1], [0], [0], [1], [0, 0, 1, 1], [], []>} : vector<8x32xf32>, vector<32x64xf32>, vector<8x64xf32> -> vector<8x64xf32>
    %c0_52 = arith.constant 0 : index
    %c0_53 = arith.constant 0 : index
    %c0_54 = arith.constant 0 : index
    %107 = vector.load %arg12[%c0_52, %c0_53, %c0_54] : memref<2x1x64xf32, #tpu.memory_space<vmem>>, vector<1x1x64xf32>
    %108 = vector.shape_cast %107 : vector<1x1x64xf32> to vector<1x64xf32>
    %109 = vector.broadcast %108 : vector<1x64xf32> to vector<8x64xf32>
    %110 = arith.addf %106, %109 : vector<8x64xf32>
    %cst_55 = arith.constant 5.000000e-01 : f32
    %111 = vector.broadcast %cst_55 : f32 to vector<8x64xf32>
    %112 = arith.mulf %111, %110 : vector<8x64xf32>
    %cst_56 = arith.constant 4.471500e-02 : f32
    %113 = vector.broadcast %cst_56 : f32 to vector<8x64xf32>
    %114 = arith.mulf %113, %110 : vector<8x64xf32>
    %115 = arith.mulf %114, %110 : vector<8x64xf32>
    %116 = arith.mulf %115, %110 : vector<8x64xf32>
    %117 = arith.addf %110, %116 : vector<8x64xf32>
    %cst_57 = arith.constant 0.797884583 : f32
    %118 = vector.broadcast %cst_57 : f32 to vector<8x64xf32>
    %119 = arith.mulf %118, %117 : vector<8x64xf32>
    %120 = math.tanh %119 : vector<8x64xf32>
    %cst_58 = arith.constant 1.000000e+00 : f32
    %121 = vector.broadcast %cst_58 : f32 to vector<8x64xf32>
    %122 = arith.addf %121, %120 : vector<8x64xf32>
    %123 = arith.mulf %112, %122 : vector<8x64xf32>
    %c0_59 = arith.constant 0 : index
    %c0_60 = arith.constant 0 : index
    %c0_61 = arith.constant 0 : index
    %124 = vector.load %arg13[%c0_59, %c0_60, %c0_61] : memref<2x64x32xf32, #tpu.memory_space<vmem>>, vector<1x64x32xf32>
    %125 = vector.shape_cast %124 : vector<1x64x32xf32> to vector<64x32xf32>
    %cst_62 = arith.constant dense<0.000000e+00> : vector<8x32xf32>
    %126 = tpu.matmul %123, %125, %cst_62 {dimension_numbers = #tpu.dot_dimension_numbers<[1], [0], [0], [1], [0, 0, 1, 1], [], []>} : vector<8x64xf32>, vector<64x32xf32>, vector<8x32xf32> -> vector<8x32xf32>
    %c0_63 = arith.constant 0 : index
    %c0_64 = arith.constant 0 : index
    %c0_65 = arith.constant 0 : index
    %127 = vector.load %arg14[%c0_63, %c0_64, %c0_65] : memref<2x1x32xf32, #tpu.memory_space<vmem>>, vector<1x1x32xf32>
    %128 = vector.shape_cast %127 : vector<1x1x32xf32> to vector<1x32xf32>
    %129 = vector.broadcast %128 : vector<1x32xf32> to vector<8x32xf32>
    %130 = arith.addf %126, %129 : vector<8x32xf32>
    %131 = arith.addf %130, %103 : vector<8x32xf32>
    %c0_66 = arith.constant 0 : index
    %c0_67 = arith.constant 0 : index
    %c0_68 = arith.constant 0 : index
    %132 = vector.load %arg15[%c0_66, %c0_67, %c0_68] : memref<2x1x32xf32, #tpu.memory_space<vmem>>, vector<1x1x32xf32>
    %133 = vector.shape_cast %132 : vector<1x1x32xf32> to vector<1x32xf32>
    %c0_69 = arith.constant 0 : index
    %c0_70 = arith.constant 0 : index
    %c0_71 = arith.constant 0 : index
    %134 = vector.load %arg16[%c0_69, %c0_70, %c0_71] : memref<2x1x32xf32, #tpu.memory_space<vmem>>, vector<1x1x32xf32>
    %135 = vector.shape_cast %134 : vector<1x1x32xf32> to vector<1x32xf32>
    %cst_72 = arith.constant dense<0.000000e+00> : vector<8xf32>
    %136 = vector.multi_reduction <add>, %131, %cst_72 [1] : vector<8x32xf32> to vector<8xf32>
    %137 = vector.shape_cast %136 : vector<8xf32> to vector<8x1xf32>
    %cst_73 = arith.constant 3.200000e+01 : f32
    %138 = vector.broadcast %cst_73 : f32 to vector<8x1xf32>
    %139 = arith.divf %137, %138 : vector<8x1xf32>
    %140 = vector.broadcast %139 : vector<8x1xf32> to vector<8x32xf32>
    %141 = arith.subf %131, %140 : vector<8x32xf32>
    %142 = arith.mulf %141, %141 : vector<8x32xf32>
    %cst_74 = arith.constant dense<0.000000e+00> : vector<8xf32>
    %143 = vector.multi_reduction <add>, %142, %cst_74 [1] : vector<8x32xf32> to vector<8xf32>
    %144 = vector.shape_cast %143 : vector<8xf32> to vector<8x1xf32>
    %cst_75 = arith.constant 3.200000e+01 : f32
    %145 = vector.broadcast %cst_75 : f32 to vector<8x1xf32>
    %146 = arith.divf %144, %145 : vector<8x1xf32>
    %cst_76 = arith.constant 9.99999996E-13 : f32
    %147 = vector.broadcast %cst_76 : f32 to vector<8x1xf32>
    %148 = arith.addf %146, %147 : vector<8x1xf32>
    %149 = math.rsqrt %148 : vector<8x1xf32>
    %150 = vector.broadcast %149 : vector<8x1xf32> to vector<8x32xf32>
    %151 = arith.mulf %141, %150 : vector<8x32xf32>
    %152 = vector.broadcast %133 : vector<1x32xf32> to vector<8x32xf32>
    %153 = arith.mulf %151, %152 : vector<8x32xf32>
    %154 = vector.broadcast %135 : vector<1x32xf32> to vector<8x32xf32>
    %155 = arith.addf %153, %154 : vector<8x32xf32>
    %c1 = arith.constant 1 : index
    %c0_77 = arith.constant 0 : index
    %c0_78 = arith.constant 0 : index
    %156 = vector.load %arg5[%c1, %c0_77, %c0_78] : memref<2x32x96xf32, #tpu.memory_space<vmem>>, vector<1x32x96xf32>
    %157 = vector.shape_cast %156 : vector<1x32x96xf32> to vector<32x96xf32>
    %cst_79 = arith.constant dense<0.000000e+00> : vector<8x96xf32>
    %158 = tpu.matmul %155, %157, %cst_79 {dimension_numbers = #tpu.dot_dimension_numbers<[1], [0], [0], [1], [0, 0, 1, 1], [], []>} : vector<8x32xf32>, vector<32x96xf32>, vector<8x96xf32> -> vector<8x96xf32>
    %c1_80 = arith.constant 1 : index
    %c0_81 = arith.constant 0 : index
    %c0_82 = arith.constant 0 : index
    %159 = vector.load %arg6[%c1_80, %c0_81, %c0_82] : memref<2x1x96xf32, #tpu.memory_space<vmem>>, vector<1x1x96xf32>
    %160 = vector.shape_cast %159 : vector<1x1x96xf32> to vector<1x96xf32>
    %161 = vector.broadcast %160 : vector<1x96xf32> to vector<8x96xf32>
    %162 = arith.addf %158, %161 : vector<8x96xf32>
    %163 = vector.extract_strided_slice %162 {offsets = [0, 0], sizes = [8, 16], strides = [1, 1]} : vector<8x96xf32> to vector<8x16xf32>
    %164 = vector.extract_strided_slice %162 {offsets = [0, 32], sizes = [8, 16], strides = [1, 1]} : vector<8x96xf32> to vector<8x16xf32>
    %165 = vector.extract_strided_slice %162 {offsets = [0, 64], sizes = [8, 16], strides = [1, 1]} : vector<8x96xf32> to vector<8x16xf32>
    %cst_83 = arith.constant dense<0.000000e+00> : vector<8x8xf32>
    %166 = tpu.matmul %163, %164, %cst_83 {dimension_numbers = #tpu.dot_dimension_numbers<[1], [1], [0], [0], [0, 0, 1, 0], [], []>} : vector<8x16xf32>, vector<8x16xf32>, vector<8x8xf32> -> vector<8x8xf32>
    %cst_84 = arith.constant 2.500000e-01 : f32
    %167 = vector.broadcast %cst_84 : f32 to vector<8x8xf32>
    %168 = arith.mulf %166, %167 : vector<8x8xf32>
    %169 = vector.broadcast %1 : vector<1x8xf32> to vector<8x8xf32>
    %170 = arith.addf %168, %169 : vector<8x8xf32>
    %cst_85 = arith.constant dense<0xFF800000> : vector<8xf32>
    %171 = vector.multi_reduction <maximumf>, %170, %cst_85 [1] : vector<8x8xf32> to vector<8xf32>
    %172 = vector.shape_cast %171 : vector<8xf32> to vector<8x1xf32>
    %173 = vector.broadcast %172 : vector<8x1xf32> to vector<8x8xf32>
    %174 = arith.subf %170, %173 : vector<8x8xf32>
    %175 = math.exp %174 : vector<8x8xf32>
    %cst_86 = arith.constant dense<0.000000e+00> : vector<8xf32>
    %176 = vector.multi_reduction <add>, %175, %cst_86 [1] : vector<8x8xf32> to vector<8xf32>
    %177 = vector.shape_cast %176 : vector<8xf32> to vector<8x1xf32>
    %178 = tpu.reciprocal %177 {approx = true} : vector<8x1xf32> -> vector<8x1xf32>
    %179 = vector.broadcast %178 : vector<8x1xf32> to vector<8x8xf32>
    %180 = arith.mulf %175, %179 : vector<8x8xf32>
    %cst_87 = arith.constant dense<0.000000e+00> : vector<8x16xf32>
    %181 = tpu.matmul %180, %165, %cst_87 {dimension_numbers = #tpu.dot_dimension_numbers<[1], [0], [0], [1], [0, 0, 1, 1], [], []>} : vector<8x8xf32>, vector<8x16xf32>, vector<8x16xf32> -> vector<8x16xf32>
    %182 = vector.extract_strided_slice %162 {offsets = [0, 16], sizes = [8, 16], strides = [1, 1]} : vector<8x96xf32> to vector<8x16xf32>
    %183 = vector.extract_strided_slice %162 {offsets = [0, 48], sizes = [8, 16], strides = [1, 1]} : vector<8x96xf32> to vector<8x16xf32>
    %184 = vector.extract_strided_slice %162 {offsets = [0, 80], sizes = [8, 16], strides = [1, 1]} : vector<8x96xf32> to vector<8x16xf32>
    %cst_88 = arith.constant dense<0.000000e+00> : vector<8x8xf32>
    %185 = tpu.matmul %182, %183, %cst_88 {dimension_numbers = #tpu.dot_dimension_numbers<[1], [1], [0], [0], [0, 0, 1, 0], [], []>} : vector<8x16xf32>, vector<8x16xf32>, vector<8x8xf32> -> vector<8x8xf32>
    %cst_89 = arith.constant 2.500000e-01 : f32
    %186 = vector.broadcast %cst_89 : f32 to vector<8x8xf32>
    %187 = arith.mulf %185, %186 : vector<8x8xf32>
    %188 = vector.broadcast %1 : vector<1x8xf32> to vector<8x8xf32>
    %189 = arith.addf %187, %188 : vector<8x8xf32>
    %cst_90 = arith.constant dense<0xFF800000> : vector<8xf32>
    %190 = vector.multi_reduction <maximumf>, %189, %cst_90 [1] : vector<8x8xf32> to vector<8xf32>
    %191 = vector.shape_cast %190 : vector<8xf32> to vector<8x1xf32>
    %192 = vector.broadcast %191 : vector<8x1xf32> to vector<8x8xf32>
    %193 = arith.subf %189, %192 : vector<8x8xf32>
    %194 = math.exp %193 : vector<8x8xf32>
    %cst_91 = arith.constant dense<0.000000e+00> : vector<8xf32>
    %195 = vector.multi_reduction <add>, %194, %cst_91 [1] : vector<8x8xf32> to vector<8xf32>
    %196 = vector.shape_cast %195 : vector<8xf32> to vector<8x1xf32>
    %197 = tpu.reciprocal %196 {approx = true} : vector<8x1xf32> -> vector<8x1xf32>
    %198 = vector.broadcast %197 : vector<8x1xf32> to vector<8x8xf32>
    %199 = arith.mulf %194, %198 : vector<8x8xf32>
    %cst_92 = arith.constant dense<0.000000e+00> : vector<8x16xf32>
    %200 = tpu.matmul %199, %184, %cst_92 {dimension_numbers = #tpu.dot_dimension_numbers<[1], [0], [0], [1], [0, 0, 1, 1], [], []>} : vector<8x8xf32>, vector<8x16xf32>, vector<8x16xf32> -> vector<8x16xf32>
    %201 = tpu.concatenate %181, %200 in 1 : vector<8x16xf32>, vector<8x16xf32> -> vector<8x32xf32>
    %c1_93 = arith.constant 1 : index
    %c0_94 = arith.constant 0 : index
    %c0_95 = arith.constant 0 : index
    %202 = vector.load %arg7[%c1_93, %c0_94, %c0_95] : memref<2x32x32xf32, #tpu.memory_space<vmem>>, vector<1x32x32xf32>
    %203 = vector.shape_cast %202 : vector<1x32x32xf32> to vector<32x32xf32>
    %cst_96 = arith.constant dense<0.000000e+00> : vector<8x32xf32>
    %204 = tpu.matmul %201, %203, %cst_96 {dimension_numbers = #tpu.dot_dimension_numbers<[1], [0], [0], [1], [0, 0, 1, 1], [], []>} : vector<8x32xf32>, vector<32x32xf32>, vector<8x32xf32> -> vector<8x32xf32>
    %c1_97 = arith.constant 1 : index
    %c0_98 = arith.constant 0 : index
    %c0_99 = arith.constant 0 : index
    %205 = vector.load %arg8[%c1_97, %c0_98, %c0_99] : memref<2x1x32xf32, #tpu.memory_space<vmem>>, vector<1x1x32xf32>
    %206 = vector.shape_cast %205 : vector<1x1x32xf32> to vector<1x32xf32>
    %207 = vector.broadcast %206 : vector<1x32xf32> to vector<8x32xf32>
    %208 = arith.addf %204, %207 : vector<8x32xf32>
    %209 = arith.addf %208, %155 : vector<8x32xf32>
    %c1_100 = arith.constant 1 : index
    %c0_101 = arith.constant 0 : index
    %c0_102 = arith.constant 0 : index
    %210 = vector.load %arg9[%c1_100, %c0_101, %c0_102] : memref<2x1x32xf32, #tpu.memory_space<vmem>>, vector<1x1x32xf32>
    %211 = vector.shape_cast %210 : vector<1x1x32xf32> to vector<1x32xf32>
    %c1_103 = arith.constant 1 : index
    %c0_104 = arith.constant 0 : index
    %c0_105 = arith.constant 0 : index
    %212 = vector.load %arg10[%c1_103, %c0_104, %c0_105] : memref<2x1x32xf32, #tpu.memory_space<vmem>>, vector<1x1x32xf32>
    %213 = vector.shape_cast %212 : vector<1x1x32xf32> to vector<1x32xf32>
    %cst_106 = arith.constant dense<0.000000e+00> : vector<8xf32>
    %214 = vector.multi_reduction <add>, %209, %cst_106 [1] : vector<8x32xf32> to vector<8xf32>
    %215 = vector.shape_cast %214 : vector<8xf32> to vector<8x1xf32>
    %cst_107 = arith.constant 3.200000e+01 : f32
    %216 = vector.broadcast %cst_107 : f32 to vector<8x1xf32>
    %217 = arith.divf %215, %216 : vector<8x1xf32>
    %218 = vector.broadcast %217 : vector<8x1xf32> to vector<8x32xf32>
    %219 = arith.subf %209, %218 : vector<8x32xf32>
    %220 = arith.mulf %219, %219 : vector<8x32xf32>
    %cst_108 = arith.constant dense<0.000000e+00> : vector<8xf32>
    %221 = vector.multi_reduction <add>, %220, %cst_108 [1] : vector<8x32xf32> to vector<8xf32>
    %222 = vector.shape_cast %221 : vector<8xf32> to vector<8x1xf32>
    %cst_109 = arith.constant 3.200000e+01 : f32
    %223 = vector.broadcast %cst_109 : f32 to vector<8x1xf32>
    %224 = arith.divf %222, %223 : vector<8x1xf32>
    %cst_110 = arith.constant 9.99999996E-13 : f32
    %225 = vector.broadcast %cst_110 : f32 to vector<8x1xf32>
    %226 = arith.addf %224, %225 : vector<8x1xf32>
    %227 = math.rsqrt %226 : vector<8x1xf32>
    %228 = vector.broadcast %227 : vector<8x1xf32> to vector<8x32xf32>
    %229 = arith.mulf %219, %228 : vector<8x32xf32>
    %230 = vector.broadcast %211 : vector<1x32xf32> to vector<8x32xf32>
    %231 = arith.mulf %229, %230 : vector<8x32xf32>
    %232 = vector.broadcast %213 : vector<1x32xf32> to vector<8x32xf32>
    %233 = arith.addf %231, %232 : vector<8x32xf32>
    %c1_111 = arith.constant 1 : index
    %c0_112 = arith.constant 0 : index
    %c0_113 = arith.constant 0 : index
    %234 = vector.load %arg11[%c1_111, %c0_112, %c0_113] : memref<2x32x64xf32, #tpu.memory_space<vmem>>, vector<1x32x64xf32>
    %235 = vector.shape_cast %234 : vector<1x32x64xf32> to vector<32x64xf32>
    %cst_114 = arith.constant dense<0.000000e+00> : vector<8x64xf32>
    %236 = tpu.matmul %233, %235, %cst_114 {dimension_numbers = #tpu.dot_dimension_numbers<[1], [0], [0], [1], [0, 0, 1, 1], [], []>} : vector<8x32xf32>, vector<32x64xf32>, vector<8x64xf32> -> vector<8x64xf32>
    %c1_115 = arith.constant 1 : index
    %c0_116 = arith.constant 0 : index
    %c0_117 = arith.constant 0 : index
    %237 = vector.load %arg12[%c1_115, %c0_116, %c0_117] : memref<2x1x64xf32, #tpu.memory_space<vmem>>, vector<1x1x64xf32>
    %238 = vector.shape_cast %237 : vector<1x1x64xf32> to vector<1x64xf32>
    %239 = vector.broadcast %238 : vector<1x64xf32> to vector<8x64xf32>
    %240 = arith.addf %236, %239 : vector<8x64xf32>
    %cst_118 = arith.constant 5.000000e-01 : f32
    %241 = vector.broadcast %cst_118 : f32 to vector<8x64xf32>
    %242 = arith.mulf %241, %240 : vector<8x64xf32>
    %cst_119 = arith.constant 4.471500e-02 : f32
    %243 = vector.broadcast %cst_119 : f32 to vector<8x64xf32>
    %244 = arith.mulf %243, %240 : vector<8x64xf32>
    %245 = arith.mulf %244, %240 : vector<8x64xf32>
    %246 = arith.mulf %245, %240 : vector<8x64xf32>
    %247 = arith.addf %240, %246 : vector<8x64xf32>
    %cst_120 = arith.constant 0.797884583 : f32
    %248 = vector.broadcast %cst_120 : f32 to vector<8x64xf32>
    %249 = arith.mulf %248, %247 : vector<8x64xf32>
    %250 = math.tanh %249 : vector<8x64xf32>
    %cst_121 = arith.constant 1.000000e+00 : f32
    %251 = vector.broadcast %cst_121 : f32 to vector<8x64xf32>
    %252 = arith.addf %251, %250 : vector<8x64xf32>
    %253 = arith.mulf %242, %252 : vector<8x64xf32>
    %c1_122 = arith.constant 1 : index
    %c0_123 = arith.constant 0 : index
    %c0_124 = arith.constant 0 : index
    %254 = vector.load %arg13[%c1_122, %c0_123, %c0_124] : memref<2x64x32xf32, #tpu.memory_space<vmem>>, vector<1x64x32xf32>
    %255 = vector.shape_cast %254 : vector<1x64x32xf32> to vector<64x32xf32>
    %cst_125 = arith.constant dense<0.000000e+00> : vector<8x32xf32>
    %256 = tpu.matmul %253, %255, %cst_125 {dimension_numbers = #tpu.dot_dimension_numbers<[1], [0], [0], [1], [0, 0, 1, 1], [], []>} : vector<8x64xf32>, vector<64x32xf32>, vector<8x32xf32> -> vector<8x32xf32>
    %c1_126 = arith.constant 1 : index
    %c0_127 = arith.constant 0 : index
    %c0_128 = arith.constant 0 : index
    %257 = vector.load %arg14[%c1_126, %c0_127, %c0_128] : memref<2x1x32xf32, #tpu.memory_space<vmem>>, vector<1x1x32xf32>
    %258 = vector.shape_cast %257 : vector<1x1x32xf32> to vector<1x32xf32>
    %259 = vector.broadcast %258 : vector<1x32xf32> to vector<8x32xf32>
    %260 = arith.addf %256, %259 : vector<8x32xf32>
    %261 = arith.addf %260, %233 : vector<8x32xf32>
    %c1_129 = arith.constant 1 : index
    %c0_130 = arith.constant 0 : index
    %c0_131 = arith.constant 0 : index
    %262 = vector.load %arg15[%c1_129, %c0_130, %c0_131] : memref<2x1x32xf32, #tpu.memory_space<vmem>>, vector<1x1x32xf32>
    %263 = vector.shape_cast %262 : vector<1x1x32xf32> to vector<1x32xf32>
    %c1_132 = arith.constant 1 : index
    %c0_133 = arith.constant 0 : index
    %c0_134 = arith.constant 0 : index
    %264 = vector.load %arg16[%c1_132, %c0_133, %c0_134] : memref<2x1x32xf32, #tpu.memory_space<vmem>>, vector<1x1x32xf32>
    %265 = vector.shape_cast %264 : vector<1x1x32xf32> to vector<1x32xf32>
    %cst_135 = arith.constant dense<0.000000e+00> : vector<8xf32>
    %266 = vector.multi_reduction <add>, %261, %cst_135 [1] : vector<8x32xf32> to vector<8xf32>
    %267 = vector.shape_cast %266 : vector<8xf32> to vector<8x1xf32>
    %cst_136 = arith.constant 3.200000e+01 : f32
    %268 = vector.broadcast %cst_136 : f32 to vector<8x1xf32>
    %269 = arith.divf %267, %268 : vector<8x1xf32>
    %270 = vector.broadcast %269 : vector<8x1xf32> to vector<8x32xf32>
    %271 = arith.subf %261, %270 : vector<8x32xf32>
    %272 = arith.mulf %271, %271 : vector<8x32xf32>
    %cst_137 = arith.constant dense<0.000000e+00> : vector<8xf32>
    %273 = vector.multi_reduction <add>, %272, %cst_137 [1] : vector<8x32xf32> to vector<8xf32>
    %274 = vector.shape_cast %273 : vector<8xf32> to vector<8x1xf32>
    %cst_138 = arith.constant 3.200000e+01 : f32
    %275 = vector.broadcast %cst_138 : f32 to vector<8x1xf32>
    %276 = arith.divf %274, %275 : vector<8x1xf32>
    %cst_139 = arith.constant 9.99999996E-13 : f32
    %277 = vector.broadcast %cst_139 : f32 to vector<8x1xf32>
    %278 = arith.addf %276, %277 : vector<8x1xf32>
    %279 = math.rsqrt %278 : vector<8x1xf32>
    %280 = vector.broadcast %279 : vector<8x1xf32> to vector<8x32xf32>
    %281 = arith.mulf %271, %280 : vector<8x32xf32>
    %282 = vector.broadcast %263 : vector<1x32xf32> to vector<8x32xf32>
    %283 = arith.mulf %281, %282 : vector<8x32xf32>
    %284 = vector.broadcast %265 : vector<1x32xf32> to vector<8x32xf32>
    %285 = arith.addf %283, %284 : vector<8x32xf32>
    %c0_140 = arith.constant 0 : index
    %c0_141 = arith.constant 0 : index
    %286 = vector.load %arg17[%c0_140, %c0_141] : memref<32x128xf32, #tpu.memory_space<vmem>>, vector<32x128xf32>
    %cst_142 = arith.constant dense<0.000000e+00> : vector<8x128xf32>
    %287 = tpu.matmul %285, %286, %cst_142 {dimension_numbers = #tpu.dot_dimension_numbers<[1], [0], [0], [1], [0, 0, 1, 1], [], []>} : vector<8x32xf32>, vector<32x128xf32>, vector<8x128xf32> -> vector<8x128xf32>
    %c0_143 = arith.constant 0 : index
    %c0_144 = arith.constant 0 : index
    %288 = vector.load %arg18[%c0_143, %c0_144] : memref<1x128xf32, #tpu.memory_space<vmem>>, vector<1x128xf32>
    %289 = vector.broadcast %288 : vector<1x128xf32> to vector<8x128xf32>
    %290 = arith.addf %287, %289 : vector<8x128xf32>
    %c0_145 = arith.constant 0 : index
    %c0_146 = arith.constant 0 : index
    %c0_147 = arith.constant 0 : index
    %291 = vector.load %arg19[%c0_145, %c0_146, %c0_147] : memref<1x8x128xf32, #tpu.memory_space<vmem>>, vector<1x8x128xf32>
    %292 = vector.shape_cast %291 : vector<1x8x128xf32> to vector<8x128xf32>
    %293 = vector.shape_cast %290 : vector<8x128xf32> to vector<1x8x128xf32>
    tpu.vector_store %arg19[%c0_145, %c0_146, %c0_147], %293 {strides = array<i32>} : memref<1x8x128xf32, #tpu.memory_space<vmem>>, vector<1x8x128xf32>,
    return
  }
  func.func @transform_0(%arg0: i32) -> (i32, i32, i32) {
    %c0_i32 = arith.constant 0 : i32
    %c0_i32_0 = arith.constant 0 : i32
    %c0_i32_1 = arith.constant 0 : i32
    return %arg0, %c0_i32, %c0_i32_0 : i32, i32, i32
  }
  func.func @transform_1(%arg0: i32) -> (i32, i32, i32) {
    %c0_i32 = arith.constant 0 : i32
    %c0_i32_0 = arith.constant 0 : i32
    %c0_i32_1 = arith.constant 0 : i32
    return %arg0, %c0_i32, %c0_i32_0 : i32, i32, i32
  }
  func.func @transform_2(%arg0: i32) -> (i32, i32) {
    %c0_i32 = arith.constant 0 : i32
    %c0_i32_0 = arith.constant 0 : i32
    %c0_i32_1 = arith.constant 0 : i32
    return %c0_i32, %c0_i32_0 : i32, i32
  }
  func.func @transform_3(%arg0: i32) -> (i32, i32) {
    %c0_i32 = arith.constant 0 : i32
    %c0_i32_0 = arith.constant 0 : i32
    %c0_i32_1 = arith.constant 0 : i32
    return %c0_i32, %c0_i32_0 : i32, i32
  }
  func.func @transform_4(%arg0: i32) -> (i32, i32, i32) {
    %c0_i32 = arith.constant 0 : i32
    %c0_i32_0 = arith.constant 0 : i32
    %c0_i32_1 = arith.constant 0 : i32
    %c0_i32_2 = arith.constant 0 : i32
    return %c0_i32, %c0_i32_0, %c0_i32_1 : i32, i32, i32
  }
  func.func @transform_5(%arg0: i32) -> (i32, i32, i32) {
    %c0_i32 = arith.constant 0 : i32
    %c0_i32_0 = arith.constant 0 : i32
    %c0_i32_1 = arith.constant 0 : i32
    %c0_i32_2 = arith.constant 0 : i32
    return %c0_i32, %c0_i32_0, %c0_i32_1 : i32, i32, i32
  }
  func.func @transform_6(%arg0: i32) -> (i32, i32, i32) {
    %c0_i32 = arith.constant 0 : i32
    %c0_i32_0 = arith.constant 0 : i32
    %c0_i32_1 = arith.constant 0 : i32
    %c0_i32_2 = arith.constant 0 : i32
    return %c0_i32, %c0_i32_0, %c0_i32_1 : i32, i32, i32
  }
  func.func @transform_7(%arg0: i32) -> (i32, i32, i32) {
    %c0_i32 = arith.constant 0 : i32
    %c0_i32_0 = arith.constant 0 : i32
    %c0_i32_1 = arith.constant 0 : i32
    %c0_i32_2 = arith.constant 0 : i32
    return %c0_i32, %c0_i32_0, %c0_i32_1 : i32, i32, i32
  }
  func.func @transform_8(%arg0: i32) -> (i32, i32, i32) {
    %c0_i32 = arith.constant 0 : i32
    %c0_i32_0 = arith.constant 0 : i32
    %c0_i32_1 = arith.constant 0 : i32
    %c0_i32_2 = arith.constant 0 : i32
    return %c0_i32, %c0_i32_0, %c0_i32_1 : i32, i32, i32
  }
  func.func @transform_9(%arg0: i32) -> (i32, i32, i32) {
    %c0_i32 = arith.constant 0 : i32
    %c0_i32_0 = arith.constant 0 : i32
    %c0_i32_1 = arith.constant 0 : i32
    %c0_i32_2 = arith.constant 0 : i32
    return %c0_i32, %c0_i32_0, %c0_i32_1 : i32, i32, i32
  }
  func.func @transform_10(%arg0: i32) -> (i32, i32, i32) {
    %c0_i32 = arith.constant 0 : i32
    %c0_i32_0 = arith.constant 0 : i32
    %c0_i32_1 = arith.constant 0 : i32
    %c0_i32_2 = arith.constant 0 : i32
    return %c0_i32, %c0_i32_0, %c0_i32_1 : i32, i32, i32
  }
  func.func @transform_11(%arg0: i32) -> (i32, i32, i32) {
    %c0_i32 = arith.constant 0 : i32
    %c0_i32_0 = arith.constant 0 : i32
    %c0_i32_1 = arith.constant 0 : i32
    %c0_i32_2 = arith.constant 0 : i32
    return %c0_i32, %c0_i32_0, %c0_i32_1 : i32, i32, i32
  }
  func.func @transform_12(%arg0: i32) -> (i32, i32, i32) {
    %c0_i32 = arith.constant 0 : i32
    %c0_i32_0 = arith.constant 0 : i32
    %c0_i32_1 = arith.constant 0 : i32
    %c0_i32_2 = arith.constant 0 : i32
    return %c0_i32, %c0_i32_0, %c0_i32_1 : i32, i32, i32
  }
  func.func @transform_13(%arg0: i32) -> (i32, i32, i32) {
    %c0_i32 = arith.constant 0 : i32
    %c0_i32_0 = arith.constant 0 : i32
    %c0_i32_1 = arith.constant 0 : i32
    %c0_i32_2 = arith.constant 0 : i32
    return %c0_i32, %c0_i32_0, %c0_i32_1 : i32, i32, i32
  }
  func.func @transform_14(%arg0: i32) -> (i32, i32, i32) {
    %c0_i32 = arith.constant 0 : i32
    %c0_i32_0 = arith.constant 0 : i32
    %c0_i32_1 = arith.constant 0 : i32
    %c0_i32_2 = arith.constant 0 : i32
    return %c0_i32, %c0_i32_0, %c0_i32_1 : i32, i32, i32
  }
  func.func @transform_15(%arg0: i32) -> (i32, i32, i32) {
    %c0_i32 = arith.constant 0 : i32
    %c0_i32_0 = arith.constant 0 : i32
    %c0_i32_1 = arith.constant 0 : i32
    %c0_i32_2 = arith.constant 0 : i32
    return %c0_i32, %c0_i32_0, %c0_i32_1 : i32, i32, i32
  }
  func.func @transform_16(%arg0: i32) -> (i32, i32) {
    %c0_i32 = arith.constant 0 : i32
    %c0_i32_0 = arith.constant 0 : i32
    %c0_i32_1 = arith.constant 0 : i32
    return %c0_i32, %c0_i32_0 : i32, i32
  }
  func.func @transform_17(%arg0: i32) -> (i32, i32) {
    %c0_i32 = arith.constant 0 : i32
    %c0_i32_0 = arith.constant 0 : i32
    %c0_i32_1 = arith.constant 0 : i32
    return %c0_i32, %c0_i32_0 : i32, i32
  }
  func.func @transform_18(%arg0: i32) -> (i32, i32, i32) {
    %c0_i32 = arith.constant 0 : i32
    %c0_i32_0 = arith.constant 0 : i32
    %c0_i32_1 = arith.constant 0 : i32
    return %arg0, %c0_i32, %c0_i32_0 : i32, i32, i32
  }
}

</mosaic_0001>

<bundles_post_ra>
// kernel: forward.1
= control target key start
LH: loop header
LB: loop body
LE: loop exit
PB: predicated region body
PF: predicated region fallthrough
CT: control target
= control target key end

     0   :  { %s2807_s27 = smov 0   ;;  %s3155_s0 = inlined_call_operand.vmem [shape: f32[2,8,32], index: 0, kind: input, shape index: {}]   ;;  %s3156_s1 = inlined_call_operand.vmem [shape: f32[2,1,8], index: 1, kind: input, shape index: {}]   ;;  %s3157_s2 = inlined_call_operand.vmem [shape: f32[1,32], index: 2, kind: input, shape index: {}]   ;;  %s3158_s3 = inlined_call_operand.vmem [shape: f32[1,32], index: 3, kind: input, shape index: {}]   ;;  %s3159_s4 = inlined_call_operand.vmem [shape: f32[2,32,96], index: 4, kind: input, shape index: {}]   ;;  %s3160_s5 = inlined_call_operand.vmem [shape: f32[2,1,96], index: 5, kind: input, shape index: {}]   ;;  %s3161_s6 = inlined_call_operand.vmem [shape: f32[2,32,32], index: 6, kind: input, shape index: {}]   ;;  %s3162_s7 = inlined_call_operand.vmem [shape: f32[2,1,32], index: 7, kind: input, shape index: {}]   ;;  %s3163_s8 = inlined_call_operand.vmem [shape: f32[2,1,32], index: 8, kind: input, shape index: {}]   ;;  %s3164_s9 = inlined_call_operand.vmem [shape: f32[2,1,32], index: 9, kind: input, shape index: {}]   ;;  %s3165_s10 = inlined_call_operand.vmem [shape: f32[2,32,64], index: 10, kind: input, shape index: {}]   ;;  %s3166_s11 = inlined_call_operand.vmem [shape: f32[2,1,64], index: 11, kind: input, shape index: {}]   ;;  %s3167_s12 = inlined_call_operand.vmem [shape: f32[2,64,32], index: 12, kind: input, shape index: {}]   ;;  %s3168_s13 = inlined_call_operand.vmem [shape: f32[2,1,32], index: 13, kind: input, shape index: {}]   ;;  %s3169_s14 = inlined_call_operand.vmem [shape: f32[2,1,32], index: 14, kind: input, shape index: {}]   ;;  %s3170_s15 = inlined_call_operand.vmem [shape: f32[2,1,32], index: 15, kind: input, shape index: {}]   ;;  %s3171_s16 = inlined_call_operand.vmem [shape: f32[32,128], index: 16, kind: input, shape index: {}]   ;;  %s3172_s17 = inlined_call_operand.vmem [shape: f32[1,128], index: 17, kind: input, shape index: {}]   ;;  %s3173_s18 = inlined_call_operand.vmem [shape: f32[2,8,128], index: 18, kind: output, shape index: {}]  }
   0x1   :  { %3177 = sst [smem:[#allocation2_spill]] %s3155_s0 }
   0x2   :  { %3178 = sst [smem:[#allocation3_spill]] %s3156_s1 }
   0x3   :  { %3179 = sst [smem:[#allocation4_spill]] %s3157_s2 }
   0x4 LB: > { %s2280_s28 = sadd.s32 4294967295, %s2701_s27   ;;  %p2284_p0 = scmp.ge.s32.totalorder %s2701_s27, 1  ;;  %s2701_s27 = sphi %s2807_s27, %s28_s27  }
   0x5   : > { %p519_p1 = scmp.lt.s32.totalorder %s2701_s27, 3 }
   0x7   : > { %p520_p2 = pnand %p2284_p0, %p519_p1 }
   0x8   : > { %p574_p3 = scmp.lt.s32.totalorder (!%p520_p2), %s2280_s28, 1  ;;  %vm589_vm0 = vcmask (!%p520_p2), 261120   ;;  %s3180_s19 = sld [smem:[#allocation2_spill]] (!%p520_p2)  ;;  %v618_v7 = vld [vmem:[%s3159_s4] sm:$0xff] (!%p520_p2)  ;;  %v619_v8 = vld [vmem:[%s3159_s4 + $0x8] sm:$0xff] (!%p520_p2)  ;;  %v620_v9 = vld [vmem:[%s3159_s4 + $0x10] sm:$0xff] (!%p520_p2) }
   0x9   : > { %523 = sbr.rel (%p520_p2) target bundleno = 6060 (0x17ac), region = 92  ;;  %v2703_v10 = vmov (!%p520_p2), 0.0|0.0   ;;  %v2583_v11 = vpack.c.bf16 (!%p520_p2), %v619_v8, %v618_v7  ;;  %v621_v12 = vld [vmem:[%s3159_s4 + $0x18] sm:$0xff] (!%p520_p2)  ;;  %vm2704_vm1 = vmmov (!%p520_p2), 0   ;;  %v2705_v13 = vmov (!%p520_p2), 0.0   ;;  %s3176_s2 = smov (!%p520_p2), 64  }
   0xa   : > { %2582 = vmatprep.subr.bf16.mxu0 (!%p520_p2), %v2703_v10  ;;  %2435 = vmatprep.mubr.msk.f32.mxu0 (!%p520_p2), %vm2704_vm1, %v2705_v13  ;;  %v2586_v14 = vpack.c.bf16 (!%p520_p2), %v621_v12, %v620_v9  ;;  %v2288_v21 = vld [vmem:[%s3158_s3] ss:$0 sm:$0xff] (!%p520_p2)  ;;  %s2707_s23 = smov (!%p520_p2), 96   ;;  %s2708_s24 = smov (!%p520_p2), 80   ;;  %vm705_vm2 = vcmask (!%p520_p2), 130048   ;;  %vm788_vm3 = vcmask (!%p520_p2), 64512  }
   0xb   : > { %2438 = vmatprep.subr.mxu1 (!%p520_p2), %v2705_v13  ;;  %2440 = vmatprep.mubr.msk.f32.mxu1 (!%p520_p2), %vm2704_vm1, %v2705_v13  ;;  %v2289_v24 = vld [vmem:[%s3160_s5] ss:$0 sm:$0xff] (!%p520_p2)  ;;  %s3182_s30 = sld [smem:[#allocation3_spill]] (!%p520_p2)  ;;  %v1049_v63 = vld [vmem:[%s3161_s6 + $0x8] sm:$0xff] (!%p520_p2)  ;;  %s3175_s20 = smov (!%p520_p2), 16   ;;  %vm1270_vm4 = vcmask (!%p520_p2), 523264  }
   0xc   : > { %2584 = vmatpush3.bf16.msra.mxu0 (!%p520_p2), %v2583_v11  ;;  %v1048_v62 = vld [vmem:[%s3161_s6] sm:$0xff] (!%p520_p2)  ;;  %s3184_s21 = smov (!%p520_p2), 16  }
   0xd   : > { %2585 = vmatprep.subr.bf16.mxu0 (!%p520_p2), %v2703_v10  ;;  %v2298_v8 = vld [vmem:[%s3162_s7] ss:$0 sm:$0xff] (!%p520_p2) }
  0x10   : > { %s3187_s28 = smov (!%p574_p3, %s2280_s28), 1  ;;  %2587 = vmatpush3.bf16.msra.mxu0 %v2586_v14 }
  0x11   : > { %s3174_s29 = sshll.u32 %s3187_s28, 3  ;;  %2588 = vmatprep.subr.bf16.mxu0 %v2703_v10  ;;  %s580_s0 = scalar_lea.vmem %s3182_s30, %s3187_s28 }
  0x12   : > { %s577_s1 = scalar_lea.vmem %s3180_s19, %s3174_s29  ;;  %s3181_s19 = sld [smem:[#allocation4_spill]]  ;;  %v2873_v30 = vld [vmem:[%s580_s0] ss:$0 sm:$0xff] }
  0x13   : > { %v586_v0 = vld [vmem:[%s577_s1] sm:$0xff]  ;;  %s2710_s1 = smov 48  }
  0x14   : > { %v590_v1 = vsel %vm589_vm0, %v586_v0, 0.0 }
  0x15   : > { %591 = vadd.xlane.f32.xlu0 %v590_v1  ;;  %v2589_v1 = vpack.c.bf16 %v1049_v63, %v1048_v62  ;;  %v2304_v62 = vld [vmem:[%s3168_s13] ss:$0 sm:$0xff] }
  0x18   : > { %v2287_v19 = vld [vmem:[%s3181_s19] ss:$0 sm:$0xff]  ;;  %s2709_s19 = smov 112  }
  0xa2   : > { %v592_v2 = vpop.xlane.xlu0 %591 }
  0xa3   : > { %v594_v3 = vmul.f32 0.03125, %v592_v2  ;;  %v1051_v2 = vld [vmem:[%s3161_s6 + $0x18] sm:$0xff] }
  0xa5   : > { %v595_v4 = vsub.f32 %v586_v0, %v594_v3  ;;  %v1050_v0 = vld [vmem:[%s3161_s6 + $0x10] sm:$0xff] }
  0xa6   : > { %v2592_v3 = vpack.c.bf16 %v1051_v2, %v1050_v0 }
  0xa7   : > { %v596_v5 = vmul.f32 %v595_v4, %v595_v4 }
  0xa9   : > { %v597_v6 = vsel %vm589_vm0, %v596_v5, 0.0 }
  0xaa   : > { %598 = vadd.xlane.f32.xlu0 %v597_v6 }
 0x137   : > { %v599_v15 = vpop.xlane.xlu0 %598 }
 0x138   : > { %v600_v16 = vmul.f32 0.03125, %v599_v15 }
 0x13a   : > { %v601_v17 = vadd.f32 1e-12, %v600_v16 }
 0x13c   : > { %2665 = vrsqrt.f32 %v601_v17 }
 0x146   : > { %v2666_v18 = vpop.eup %2665 }
 0x147   : > { %v603_v20 = vmul.f32 %v2666_v18, %v595_v4 }
 0x149   : > { %v610_v22 = vmul.f32 %v2287_v19, %v603_v20 }
 0x14b   : > { %v2851_v23 = vadd.f32 %v2288_v21, %v610_v22  ;;  %v1162_v21 = vld [vmem:[%s3165_s10] sm:$0xff]  ;;  %v1163_v22 = vld [vmem:[%s3165_s10 + $0x8] sm:$0xff] }
 0x14d   : > { %2436 = vmatmul.mubr.msk.f32.vlgmr.msra.gmra.mrb[0].mxu0 %vm589_vm0, %v2851_v23 }
 0x14e   : > { %2466 = vmatprep.mubr.msk.f32.mxu0 %vm2704_vm1, %v2705_v13  ;;  %2590 = vmatpush3.bf16.msra.mxu0 %v2589_v1 }
 0x14f   : > { %2591 = vmatprep.subr.bf16.mxu0 %v2703_v10 }
 0x152   : > { %2593 = vmatpush3.bf16.msra.mxu0 %v2592_v3 }
 0x153   : > { %2600 = vmatprep.subr.bf16.mxu0 %v2703_v10 }
 0x220   : > { %v698_v25 = vpop.f32.mrb[0].mxu0 }
 0x221   : > { %v699_v26 = vadd.f32 %v2289_v24, %v698_v25  ;;  %v2437_v27 = vpop.f32.mrb[1].mxu0  ;;  %v2595_v24 = vpack.c.bf16 %v1163_v22, %v1162_v21  ;;  %v1165_v25 = vld [vmem:[%s3165_s10 + $0x18] sm:$0xff]  ;;  %v2306_v21 = vld [vmem:[%s3169_s14] ss:$0 sm:$0xff] }
 0x223   : > { %800 = vrot.lane.b32.xlu0 %v699_v26, %s3176_s2  ;;  %703 = vrot.lane.b32.xlu1 %v699_v26, %s2707_s23 }
 0x227   : > { %878 = vrot.lane.b32.xlu0 %v699_v26, %s2708_s24 }
 0x295   : > { %v704_v28 = vpop.permute.xlu1 %703  ;;  %v801_v29 = vpop.permute.xlu0 %800 }
 0x296   : > { %2439 = vmatpush3.xpose.msk.msra.mxu1 %vm705_vm2, %v704_v28 }
 0x297   : > { %2443 = vmatprep.subr.mxu1 %v2705_v13 }
 0x299   : > { %2441 = vmatmul.mubr.msk.f32.vlgmr.msra.gmra.mrb[0].mxu1 %vm705_vm2, %v699_v26  ;;  %v879_v41 = vpop.permute.xlu0 %878 }
 0x29a   : > { %2444 = vmatpush3.msra.mxu1 %v801_v29  ;;  %2445 = vmatprep.mubr.msk.f32.mxu1 %vm2704_vm1, %v2705_v13 }
 0x29b   : > { %2448 = vmatprep.subr.mxu1 %v2705_v13 }
 0x36c   : > { %v776_v31 = vpop.f32.mrb[0].mxu1 }
 0x36d   : > { %v780_v32 = vmul.f32 0.25, %v776_v31  ;;  %v2442_v33 = vpop.f32.mrb[1].mxu1 }
 0x36f   : > { %v787_v34 = vadd.f32 %v2873_v30, %v780_v32  ;;  %v2300_v32 = vld [vmem:[%s3163_s8] ss:$0 sm:$0xff] }
 0x371   : > { %v789_v35 = vsel %vm788_vm3, %v787_v34, -inf }
 0x372   : > { %790 = vmax.xlane.f32.xlu1 %v789_v35 }
 0x3ff   : > { %v791_v36 = vpop.xlane.xlu1 %790 }
 0x400   : > { %v792_v37 = vsub.f32 %v787_v34, %v791_v36  ;;  %v2301_v34 = vld [vmem:[%s3164_s9] ss:$0 sm:$0xff] }
 0x402   : > { %v793_v38 = vmul.f32 1.442695, %v792_v37  ;;  %v1255_v37 = vld [vmem:[%s3167_s12] sm:$0xff] }
 0x404   : > { %2667 = vpow2.f32 %v793_v38  ;;  %v1256_v38 = vld [vmem:[%s3167_s12 + $0x8] sm:$0xff] }
 0x40e   : > { %v2668_v39 = vpop.eup %2667 }
 0x40f   : > { %v795_v40 = vsel %vm788_vm3, %v2668_v39, 0.0 }
 0x410   : > { %796 = vadd.xlane.f32.xlu0 %v795_v40  ;;  %v1257_v40 = vld [vmem:[%s3167_s12 + $0x10] sm:$0xff] }
 0x426   : > { %876 = vrot.lane.b32.xlu0 %v699_v26, %s2709_s19 }
 0x49d   : > { %v797_v42 = vpop.xlane.xlu0 %796 }
 0x49e   : > { %2669 = vrcp.f32 %v797_v42 }
 0x4a1   : > { %v877_v45 = vpop.permute.xlu0 %876 }
 0x4a8   : > { %v2670_v43 = vpop.eup %2669 }
 0x4a9   : > { %v799_v44 = vmul.f32 %v2670_v43, %v2668_v39  ;;  %v2601_v39 = vpack.c.bf16 %v1256_v38, %v1255_v37  ;;  %v1259_v43 = vld [vmem:[%s3167_s12 + $0x20] sm:$0xff] }
 0x4ab   : > { %2446 = vmatmul.mubr.msk.f32.vlgmr.msra.gmra.mrb[2].mxu1 %vm788_vm3, %v799_v44  ;;  %v1260_v44 = vld [vmem:[%s3167_s12 + $0x28] sm:$0xff] }
 0x4ac   : > { %2449 = vmatpush3.xpose.msk.msra.mxu1 %vm705_vm2, %v879_v41  ;;  %2450 = vmatprep.mubr.msk.f32.mxu1 %vm2704_vm1, %v2705_v13  ;;  %v1258_v41 = vld [vmem:[%s3167_s12 + $0x18] sm:$0xff] }
 0x4ad   : > { %2453 = vmatprep.subr.mxu1 %v2705_v13  ;;  %v2604_v42 = vpack.c.bf16 %v1258_v41, %v1257_v40 }
 0x4af   : > { %2451 = vmatmul.mubr.msk.f32.vlgmr.msra.gmra.mrb[4].mxu1 %vm705_vm2, %v877_v45  ;;  %v2607_v45 = vpack.c.bf16 %v1260_v44, %v1259_v43 }
 0x4b0   : > { %2455 = vmatprep.mubr.msk.f32.mxu1 %vm2704_vm1, %v2705_v13 }
 0x57e   : > { %v872_v46 = vpop.f32.mrb[2].mxu1 }
 0x57f   : > { %v2447_v47 = vpop.f32.mrb[3].mxu1 }
 0x580   : > { %v1262_v47 = vld [vmem:[%s3167_s12 + $0x38] sm:$0xff] }
 0x582   : > { %v950_v48 = vpop.f32.mrb[4].mxu1 }
 0x583   : > { %v954_v49 = vmul.f32 0.25, %v950_v48  ;;  %v2452_v50 = vpop.f32.mrb[5].mxu1 }
 0x585   : > { %v955_v51 = vadd.f32 %v2873_v30, %v954_v49  ;;  %v2302_v49 = vld [vmem:[%s3166_s11] ss:$0 sm:$0xff] }
 0x587   : > { %v956_v52 = vsel %vm788_vm3, %v955_v51, -inf }
 0x588   : > { %957 = vmax.xlane.f32.xlu1 %v956_v52 }
 0x599   : > { %967 = vrot.lane.b32.xlu1 %v699_v26, %s2710_s1 }
 0x615   : > { %v958_v53 = vpop.xlane.xlu1 %957 }
 0x616   : > { %v959_v54 = vsub.f32 %v955_v51, %v958_v53 }
 0x618   : > { %v960_v55 = vmul.f32 1.442695, %v959_v54 }
 0x619   : > { %v968_v56 = vpop.permute.xlu1 %967 }
 0x61a   : > { %2671 = vpow2.f32 %v960_v55  ;;  %2454 = vmatpush3.msra.mxu1 %v968_v56 }
 0x61b   : > { %2594 = vmatprep.subr.bf16.mxu1 %v2703_v10 }
 0x624   : > { %v2672_v57 = vpop.eup %2671 }
 0x625   : > { %v962_v58 = vsel %vm788_vm3, %v2672_v57, 0.0 }
 0x626   : > { %963 = vadd.xlane.f32.xlu0 %v962_v58 }
 0x6b3   : > { %v964_v59 = vpop.xlane.xlu0 %963 }
 0x6b4   : > { %2673 = vrcp.f32 %v964_v59 }
 0x6be   : > { %v2674_v60 = vpop.eup %2673 }
 0x6bf   : > { %v966_v61 = vmul.f32 %v2674_v60, %v2672_v57 }
 0x6c1   : > { %2456 = vmatmul.mubr.msk.f32.vlgmr.msra.gmra.mrb[6].mxu1 %vm788_vm3, %v966_v61 }
 0x6c2   : > { %2477 = vmatprep.mubr.msk.f32.mxu1 %vm2704_vm1, %v2705_v13  ;;  %2596 = vmatpush3.bf16.msra.mxu1 %v2595_v24  ;;  %v2307_v24 = vld [vmem:[%s3170_s15] ss:$0 sm:$0xff] }
 0x6c3   : > { %2597 = vmatprep.subr.bf16.mxu1 %v2703_v10 }
 0x794   : > { %v1039_v4 = vpop.f32.mrb[6].mxu1 }
 0x795   : > { %1044 = vrot.lane.b32.xlu1 %v1039_v4, %s3175_s20  ;;  %v2457_v5 = vpop.f32.mrb[7].mxu1  ;;  %s3185_s20 = sshll.u32 %s3187_s28, 3 }
 0x807   : > { %v1045_v6 = vpop.permute.xlu1 %1044 }
 0x808   : > { %v1047_v7 = vsel %vm705_vm2, %v872_v46, %v1045_v6  ;;  %v1261_v46 = vld [vmem:[%s3167_s12 + $0x30] sm:$0xff] }
 0x809   : > { %2467 = vmatmul.mubr.msk.f32.vlgmr.msra.gmra.mrb[2].mxu0 %vm589_vm0, %v1047_v7  ;;  %v2610_v48 = vpack.c.bf16 %v1262_v47, %v1261_v46 }
 0x80a   : > { %2496 = vmatprep.mubr.msk.f32.mxu0 %vm2704_vm1, %v2705_v13  ;;  %2602 = vmatpush3.bf16.msra.mxu0 %v2601_v39 }
 0x80b   : > { %2603 = vmatprep.subr.bf16.mxu0 %v2703_v10 }
 0x80e   : > { %2605 = vmatpush3.bf16.msra.mxu0 %v2604_v42 }
 0x80f   : > { %2606 = vmatprep.subr.bf16.mxu0 %v2703_v10 }
 0x812   : > { %2608 = vmatpush3.bf16.msra.mxu0 %v2607_v45 }
 0x813   : > { %2609 = vmatprep.subr.bf16.mxu0 %v2703_v10 }
 0x816   : > { %2611 = vmatpush3.bf16.msra.mxu0 %v2610_v48 }
 0x817   : > { %2520 = vmatprep.subr.mxu0 %v2705_v13 }
 0x8dc   : > { %v1128_v9 = vpop.f32.mrb[2].mxu0 }
 0x8dd   : > { %v1129_v11 = vadd.f32 %v2298_v8, %v1128_v9  ;;  %v2468_v12 = vpop.f32.mrb[3].mxu0  ;;  %v2308_v9 = vld [vmem:[%s3159_s4 + $0x20] sm:$0xff] }
 0x8df   : > { %v1132_v14 = vadd.f32 %v1129_v11, %v2851_v23  ;;  %v1164_v23 = vld [vmem:[%s3165_s10 + $0x10] sm:$0xff]  ;;  %v2309_v11 = vld [vmem:[%s3159_s4 + $0x28] sm:$0xff] }
 0x8e0   : > { %v2598_v26 = vpack.c.bf16 %v1165_v25, %v1164_v23  ;;  %v2613_v12 = vpack.c.bf16 %v2309_v11, %v2308_v9  ;;  %v2326_v9 = vld [vmem:[%s3162_s7 + $0x1] ss:$0 sm:$0xff] }
 0x8e1   : > { %v1135_v15 = vsel %vm589_vm0, %v1132_v14, 0.0 }
 0x8e2   : > { %1136 = vadd.xlane.f32.xlu1 %v1135_v15  ;;  %2599 = vmatpush3.bf16.msra.mxu1 %v2598_v26  ;;  %v2311_v15 = vld [vmem:[%s3159_s4 + $0x38] sm:$0xff]  ;;  %v2313_v26 = vld [vmem:[%s3160_s5 + $0x1] ss:$0 sm:$0xff] }
 0x8e3   : > { %2612 = vmatprep.subr.bf16.mxu1 %v2703_v10 }
 0x96f   : > { %v1137_v16 = vpop.xlane.xlu1 %1136 }
 0x970   : > { %v1138_v17 = vmul.f32 0.03125, %v1137_v16 }
 0x972   : > { %v1139_v18 = vsub.f32 %v1132_v14, %v1138_v17  ;;  %v2310_v14 = vld [vmem:[%s3159_s4 + $0x30] sm:$0xff] }
 0x973   : > { %v2616_v16 = vpack.c.bf16 %v2311_v15, %v2310_v14 }
 0x974   : > { %v1140_v19 = vmul.f32 %v1139_v18, %v1139_v18 }
 0x976   : > { %v1141_v20 = vsel %vm589_vm0, %v1140_v19, 0.0 }
 0x977   : > { %1142 = vadd.xlane.f32.xlu0 %v1141_v20 }
 0xa04   : > { %v1143_v27 = vpop.xlane.xlu0 %1142 }
 0xa05   : > { %v1144_v28 = vmul.f32 0.03125, %v1143_v27 }
 0xa07   : > { %v1145_v29 = vadd.f32 1e-12, %v1144_v28 }
 0xa09   : > { %2675 = vrsqrt.f32 %v1145_v29 }
 0xa13   : > { %v2676_v31 = vpop.eup %2675 }
 0xa14   : > { %v1147_v33 = vmul.f32 %v2676_v31, %v1139_v18 }
 0xa16   : > { %v1154_v35 = vmul.f32 %v2300_v32, %v1147_v33 }
 0xa18   : > { %v1161_v36 = vadd.f32 %v2301_v34, %v1154_v35 }
 0xa1a   : > { %2478 = vmatmul.mubr.msk.f32.vlgmr.msra.gmra.mrb[8].mxu1 %vm589_vm0, %v1161_v36 }
 0xa1b   : > { %2507 = vmatprep.mubr.msk.f32.mxu1 %vm2704_vm1, %v2705_v13  ;;  %2614 = vmatpush3.bf16.msra.mxu1 %v2613_v12 }
 0xa1c   : > { %2615 = vmatprep.subr.bf16.mxu1 %v2703_v10 }
 0xa1f   : > { %2617 = vmatpush3.bf16.msra.mxu1 %v2616_v16 }
 0xa20   : > { %2510 = vmatprep.subr.mxu1 %v2705_v13 }
 0xaed   : > { %v1242_v50 = vpop.f32.mrb[8].mxu1 }
 0xaee   : > { %v1243_v51 = vadd.f32 %v2302_v49, %v1242_v50  ;;  %v2479_v52 = vpop.f32.mrb[9].mxu1 }
 0xaf0   : > { %v1247_v53 = vmul.f32 0.044715, %v1243_v51  ;;  %v1246_v59 = vmul.f32 0.5, %v1243_v51 }
 0xaf2   : > { %v1248_v54 = vmul.f32 %v1247_v53, %v1243_v51 }
 0xaf4   : > { %v1249_v55 = vmul.f32 %v1248_v54, %v1243_v51 }
 0xaf6   : > { %v1250_v56 = vadd.f32 %v1249_v55, %v1243_v51 }
 0xaf8   : > { %v1251_v57 = vmul.f32 0.7978846, %v1250_v56 }
 0xafa   : > { %2677 = vtanh.f32 %v1251_v57 }
 0xb04   : > { %v2678_v58 = vpop.eup %2677 }
 0xb05   : > { %v1253_v60 = vadd.f32 1.0, %v2678_v58 }
 0xb07   : > { %v1254_v61 = vmul.f32 %v1253_v60, %v1246_v59 }
 0xb09   : > { %2497 = vmatmul.mubr.msk.f32.vlgmr.msra.gmra.mrb[4].mxu0 %vm1270_vm4, %v1254_v61  ;;  %v2321_v61 = vld [vmem:[%s3161_s6 + $0x20] sm:$0xff] }
 0xb0a   : > { %2522 = vmatprep.mubr.msk.f32.mxu0 %vm2704_vm1, %v2705_v13 }
 0xbdc   : > { %v1340_v63 = vpop.f32.mrb[4].mxu0 }
 0xbdd   : > { %v1341_v0 = vadd.f32 %v2304_v62, %v1340_v63  ;;  %v2498_v1 = vpop.f32.mrb[5].mxu0  ;;  %v2322_v62 = vld [vmem:[%s3161_s6 + $0x28] sm:$0xff]  ;;  %v2323_v63 = vld [vmem:[%s3161_s6 + $0x30] sm:$0xff] }
 0xbde   : > { %v2324_v1 = vld [vmem:[%s3161_s6 + $0x38] sm:$0xff] }
 0xbdf   : > { %v1344_v2 = vadd.f32 %v1341_v0, %v1161_v36  ;;  %v2619_v0 = vpack.c.bf16 %v2322_v62, %v2321_v61  ;;  %v2348_v61 = vld [vmem:[%s3168_s13 + $0x1] ss:$0 sm:$0xff] }
 0xbe1   : > { %v1347_v3 = vsel %vm589_vm0, %v1344_v2, 0.0 }
 0xbe2   : > { %1348 = vadd.xlane.f32.xlu0 %v1347_v3 }
 0xc6f   : > { %v1349_v4 = vpop.xlane.xlu0 %1348 }
 0xc70   : > { %v1350_v5 = vmul.f32 0.03125, %v1349_v4 }
 0xc72   : > { %v1351_v6 = vsub.f32 %v1344_v2, %v1350_v5  ;;  %v2622_v2 = vpack.c.bf16 %v2324_v1, %v2323_v63 }
 0xc74   : > { %v1352_v7 = vmul.f32 %v1351_v6, %v1351_v6 }
 0xc76   : > { %v1353_v8 = vsel %vm589_vm0, %v1352_v7, 0.0 }
 0xc77   : > { %1354 = vadd.xlane.f32.xlu0 %v1353_v8 }
 0xd04   : > { %v1355_v17 = vpop.xlane.xlu0 %1354 }
 0xd05   : > { %v1356_v18 = vmul.f32 0.03125, %v1355_v17 }
 0xd07   : > { %v1357_v19 = vadd.f32 1e-12, %v1356_v18 }
 0xd09   : > { %2679 = vrsqrt.f32 %v1357_v19 }
 0xd13   : > { %v2680_v20 = vpop.eup %2679 }
 0xd14   : > { %v1359_v22 = vmul.f32 %v2680_v20, %v1351_v6 }
 0xd16   : > { %v1366_v23 = vmul.f32 %v2306_v21, %v1359_v22  ;;  %v2332_v22 = vld [vmem:[%s3165_s10 + $0x20] sm:$0xff] }
 0xd18   : > { %v3002_v25 = vadd.f32 %v2307_v24, %v1366_v23  ;;  %v2333_v24 = vld [vmem:[%s3165_s10 + $0x28] sm:$0xff] }
 0xd19   : > { %v2625_v23 = vpack.c.bf16 %v2333_v24, %v2332_v22 }
 0xd1a   : > { %2508 = vmatmul.mubr.msk.f32.vlgmr.msra.gmra.mrb[10].mxu1 %vm589_vm0, %v3002_v25 }
 0xd1b   : > { %2512 = vmatprep.mubr.msk.f32.mxu1 %vm2704_vm1, %v2705_v13 }
 0xded   : > { %v1456_v27 = vpop.f32.mrb[10].mxu1 }
 0xdee   : > { %v1457_v28 = vadd.f32 %v2313_v26, %v1456_v27  ;;  %v2509_v29 = vpop.f32.mrb[11].mxu1  ;;  %v2335_v26 = vld [vmem:[%s3165_s10 + $0x38] sm:$0xff] }
 0xdf0   : > { %1628 = vrot.lane.b32.xlu1 %v1457_v28, %s2708_s24  ;;  %1461 = vrot.lane.b32.xlu0 %v1457_v28, %s2707_s23  ;;  %s3183_s23 = smov 64  }
 0xdf4   : > { %1626 = vrot.lane.b32.xlu0 %v1457_v28, %s2709_s19 }
 0xe62   : > { %v1629_v31 = vpop.permute.xlu1 %1628  ;;  %v1462_v32 = vpop.permute.xlu0 %1461 }
 0xe63   : > { %2511 = vmatpush3.xpose.msk.msra.mxu1 %vm705_vm2, %v1462_v32  ;;  %2521 = vmatpush3.xpose.msk.msra.mxu0 %vm705_vm2, %v1629_v31 }
 0xe64   : > { %2515 = vmatprep.subr.mxu1 %v2705_v13  ;;  %2618 = vmatprep.subr.bf16.mxu0 %v2703_v10 }
 0xe66   : > { %2513 = vmatmul.mubr.msk.f32.vlgmr.msra.gmra.mrb[12].mxu1 %vm705_vm2, %v1457_v28  ;;  %v1627_v33 = vpop.permute.xlu0 %1626 }
 0xe67   : > { %2523 = vmatmul.mubr.msk.f32.vlgmr.msra.gmra.mrb[6].mxu0 %vm705_vm2, %v1627_v33  ;;  %2517 = vmatprep.mubr.msk.f32.mxu1 %vm2704_vm1, %v2705_v13  ;;  %v2330_v33 = vld [vmem:[%s3163_s8 + $0x1] ss:$0 sm:$0xff] }
 0xe68   : > { %2538 = vmatprep.mubr.msk.f32.mxu0 %vm2704_vm1, %v2705_v13  ;;  %2620 = vmatpush3.bf16.msra.mxu0 %v2619_v0 }
 0xe69   : > { %2621 = vmatprep.subr.bf16.mxu0 %v2703_v10 }
 0xe6c   : > { %2623 = vmatpush3.bf16.msra.mxu0 %v2622_v2 }
 0xe6d   : > { %2630 = vmatprep.subr.bf16.mxu0 %v2703_v10 }
 0xf39   : > { %v1533_v34 = vpop.f32.mrb[12].mxu1 }
 0xf3a   : > { %v1537_v35 = vmul.f32 0.25, %v1533_v34  ;;  %v2514_v36 = vpop.f32.mrb[13].mxu1  ;;  %v1700_v37 = vpop.f32.mrb[6].mxu0 }
 0xf3b   : > { %v1704_v38 = vmul.f32 0.25, %v1700_v37  ;;  %v2524_v39 = vpop.f32.mrb[7].mxu0 }
 0xf3c   : > { %v1538_v40 = vadd.f32 %v2873_v30, %v1537_v35  ;;  %v2331_v35 = vld [vmem:[%s3164_s9 + $0x1] ss:$0 sm:$0xff]  ;;  %v2340_v39 = vld [vmem:[%s3167_s12 + $0x48] sm:$0xff] }
 0xf3d   : > { %v1705_v41 = vadd.f32 %v2873_v30, %v1704_v38  ;;  %v2339_v38 = vld [vmem:[%s3167_s12 + $0x40] sm:$0xff] }
 0xf3e   : > { %v1539_v42 = vsel %vm788_vm3, %v1538_v40, -inf }
 0xf3f   : > { %1540 = vmax.xlane.f32.xlu0 %v1539_v42  ;;  %v1706_v43 = vsel %vm788_vm3, %v1705_v41, -inf  ;;  %v2342_v42 = vld [vmem:[%s3167_s12 + $0x58] sm:$0xff] }
 0xf40   : > { %1707 = vmax.xlane.f32.xlu1 %v1706_v43 }
 0xf51   : > { %1717 = vrot.lane.b32.xlu1 %v1457_v28, %s2710_s1 }
 0xfcc   : > { %v1541_v44 = vpop.xlane.xlu0 %1540 }
 0xfcd   : > { %v1542_v45 = vsub.f32 %v1538_v40, %v1541_v44  ;;  %v1708_v46 = vpop.xlane.xlu1 %1707  ;;  %v2631_v40 = vpack.c.bf16 %v2340_v39, %v2339_v38  ;;  %v2344_v44 = vld [vmem:[%s3167_s12 + $0x68] sm:$0xff] }
 0xfce   : > { %v1709_v47 = vsub.f32 %v1705_v41, %v1708_v46  ;;  %v2341_v41 = vld [vmem:[%s3167_s12 + $0x50] sm:$0xff] }
 0xfcf   : > { %v1543_v48 = vmul.f32 1.442695, %v1542_v45  ;;  %v2634_v43 = vpack.c.bf16 %v2342_v42, %v2341_v41  ;;  %v2345_v46 = vld [vmem:[%s3167_s12 + $0x70] sm:$0xff] }
 0xfd0   : > { %v1710_v49 = vmul.f32 1.442695, %v1709_v47  ;;  %v2346_v47 = vld [vmem:[%s3167_s12 + $0x78] sm:$0xff] }
 0xfd1   : > { %2681 = vpow2.f32 %v1543_v48  ;;  %v1718_v58 = vpop.permute.xlu1 %1717  ;;  %v2640_v48 = vpack.c.bf16 %v2346_v47, %v2345_v46 }
 0xfd2   : > { %2683 = vpow2.f32 %v1710_v49  ;;  %v2337_v49 = vld [vmem:[%s3166_s11 + $0x1] ss:$0 sm:$0xff] }
 0xfdb   : > { %v2682_v50 = vpop.eup %2681 }
 0xfdc   : > { %v1545_v51 = vsel %vm788_vm3, %v2682_v50, 0.0  ;;  %v2684_v30 = vpop.eup %2683 }
 0xfdd   : > { %1546 = vadd.xlane.f32.xlu0 %v1545_v51  ;;  %v1712_v52 = vsel %vm788_vm3, %v2684_v30, 0.0 }
 0xfe1   : > { %1713 = vadd.xlane.f32.xlu0 %v1712_v52 }
 0xff7   : > { %1550 = vrot.lane.b32.xlu0 %v1457_v28, %s3183_s23 }
0x106a   : > { %v1547_v53 = vpop.xlane.xlu0 %1546 }
0x106b   : > { %2685 = vrcp.f32 %v1547_v53 }
0x106e   : > { %v1714_v54 = vpop.xlane.xlu0 %1713 }
0x106f   : > { %2687 = vrcp.f32 %v1714_v54 }
0x1072   : > { %v1551_v55 = vpop.permute.xlu0 %1550 }
0x1073   : > { %2516 = vmatpush3.msra.mxu1 %v1551_v55 }
0x1074   : > { %2525 = vmatprep.subr.mxu1 %v2705_v13 }
0x1075   : > { %v2686_v56 = vpop.eup %2685 }
0x1076   : > { %v1549_v57 = vmul.f32 %v2686_v56, %v2682_v50 }
0x1078   : > { %2518 = vmatmul.mubr.msk.f32.vlgmr.msra.gmra.mrb[14].mxu1 %vm788_vm3, %v1549_v57 }
0x1079   : > { %v2688_v59 = vpop.eup %2687  ;;  %2526 = vmatpush3.msra.mxu1 %v1718_v58  ;;  %2527 = vmatprep.mubr.msk.f32.mxu1 %vm2704_vm1, %v2705_v13 }
0x107a   : > { %v1716_v60 = vmul.f32 %v2688_v59, %v2684_v30  ;;  %2624 = vmatprep.subr.bf16.mxu1 %v2703_v10 }
0x107c   : > { %2528 = vmatmul.mubr.msk.f32.vlgmr.msra.gmra.mrb[16].mxu1 %vm788_vm3, %v1716_v60 }
0x107d   : > { %2549 = vmatprep.mubr.msk.f32.mxu1 %vm2704_vm1, %v2705_v13  ;;  %2626 = vmatpush3.bf16.msra.mxu1 %v2625_v23  ;;  %v2354_v23 = vld [vmem:[%s3172_s17] ss:$0 sm:$0xff] }
0x107e   : > { %2627 = vmatprep.subr.bf16.mxu1 %v2703_v10 }
0x114b   : > { %v1622_v3 = vpop.f32.mrb[14].mxu1 }
0x114c   : > { %v2519_v4 = vpop.f32.mrb[15].mxu1 }
0x114f   : > { %v1789_v5 = vpop.f32.mrb[16].mxu1 }
0x1150   : > { %1794 = vrot.lane.b32.xlu1 %v1789_v5, %s3184_s21  ;;  %v2529_v6 = vpop.f32.mrb[17].mxu1  ;;  %s584_s21 = scalar_lea.vmem %s3173_s18, %s3185_s20 }
0x11c2   : > { %v1795_v7 = vpop.permute.xlu1 %1794 }
0x11c3   : > { %v1797_v8 = vsel %vm705_vm2, %v1622_v3, %v1795_v7 }
0x11c4   : > { %2539 = vmatmul.mubr.msk.f32.vlgmr.msra.gmra.mrb[8].mxu0 %vm589_vm0, %v1797_v8  ;;  %v2133_v8 = vld [vmem:[%s3171_s16] sm:$0xff] }
0x11c5   : > { %2568 = vmatprep.mubr.msk.f32.mxu0 %vm2704_vm1, %v2705_v13  ;;  %2632 = vmatpush3.bf16.msra.mxu0 %v2631_v40 }
0x11c6   : > { %2633 = vmatprep.subr.bf16.mxu0 %v2703_v10 }
0x11c9   : > { %2635 = vmatpush3.bf16.msra.mxu0 %v2634_v43 }
0x11ca   : > { %2636 = vmatprep.subr.bf16.mxu0 %v2703_v10 }
0x1297   : > { %v1880_v11 = vpop.f32.mrb[8].mxu0 }
0x1298   : > { %v1881_v12 = vadd.f32 %v2326_v9, %v1880_v11  ;;  %v2540_v14 = vpop.f32.mrb[9].mxu0  ;;  %v2134_v9 = vld [vmem:[%s3171_s16 + $0x8] sm:$0xff] }
0x1299   : > { %v2643_v11 = vpack.c.bf16 %v2134_v9, %v2133_v8  ;;  %v2136_v14 = vld [vmem:[%s3171_s16 + $0x18] sm:$0xff] }
0x129a   : > { %v1884_v15 = vadd.f32 %v1881_v12, %v3002_v25  ;;  %v2334_v25 = vld [vmem:[%s3165_s10 + $0x30] sm:$0xff] }
0x129b   : > { %v2628_v27 = vpack.c.bf16 %v2335_v26, %v2334_v25  ;;  %v2135_v12 = vld [vmem:[%s3171_s16 + $0x10] sm:$0xff] }
0x129c   : > { %v1889_v16 = vsel %vm589_vm0, %v1884_v15, 0.0 }
0x129d   : > { %1890 = vadd.xlane.f32.xlu0 %v1889_v16  ;;  %2629 = vmatpush3.bf16.msra.mxu1 %v2628_v27 }
0x129e   : > { %2642 = vmatprep.subr.bf16.mxu1 %v2703_v10 }
0x132a   : > { %v1891_v17 = vpop.xlane.xlu0 %1890 }
0x132b   : > { %v1892_v18 = vmul.f32 0.03125, %v1891_v17 }
0x132d   : > { %v1893_v19 = vsub.f32 %v1884_v15, %v1892_v18  ;;  %v2646_v15 = vpack.c.bf16 %v2136_v14, %v2135_v12 }
0x132f   : > { %v1894_v20 = vmul.f32 %v1893_v19, %v1893_v19 }
0x1331   : > { %v1895_v21 = vsel %vm589_vm0, %v1894_v20, 0.0 }
0x1332   : > { %1896 = vadd.xlane.f32.xlu1 %v1895_v21  ;;  %v2353_v21 = vld [vmem:[%s3170_s15 + $0x1] ss:$0 sm:$0xff] }
0x13bf   : > { %v1897_v28 = vpop.xlane.xlu1 %1896 }
0x13c0   : > { %v1898_v29 = vmul.f32 0.03125, %v1897_v28 }
0x13c2   : > { %v1899_v31 = vadd.f32 1e-12, %v1898_v29 }
0x13c4   : > { %2689 = vrsqrt.f32 %v1899_v31 }
0x13ce   : > { %v2690_v32 = vpop.eup %2689 }
0x13cf   : > { %v1901_v34 = vmul.f32 %v2690_v32, %v1893_v19 }
0x13d1   : > { %v1908_v36 = vmul.f32 %v2330_v33, %v1901_v34 }
0x13d3   : > { %v1915_v37 = vadd.f32 %v2331_v35, %v1908_v36 }
0x13d5   : > { %2550 = vmatmul.mubr.msk.f32.vlgmr.msra.gmra.mrb[18].mxu1 %vm589_vm0, %v1915_v37 }
0x13d6   : > { %2579 = vmatprep.mubr.msk.f32.mxu1 %vm2704_vm1, %v2705_v13  ;;  %v2343_v13 = vld [vmem:[%s3167_s12 + $0x60] sm:$0xff]  ;;  %2644 = vmatpush3.bf16.msra.mxu1 %v2643_v11 }
0x13d7   : > { %v2637_v45 = vpack.c.bf16 %v2344_v44, %v2343_v13  ;;  %2645 = vmatprep.subr.bf16.mxu1 %v2703_v10 }
0x13d9   : > { %2638 = vmatpush3.bf16.msra.mxu0 %v2637_v45 }
0x13da   : > { %2639 = vmatprep.subr.bf16.mxu0 %v2703_v10  ;;  %2647 = vmatpush3.bf16.msra.mxu1 %v2646_v15  ;;  %v2352_v10 = vld [vmem:[%s3169_s14 + $0x1] ss:$0 sm:$0xff] }
0x13dd   : > { %2641 = vmatpush3.bf16.msra.mxu0 %v2640_v48 }
0x14a8   : > { %v1998_v50 = vpop.f32.mrb[18].mxu1 }
0x14a9   : > { %v1999_v51 = vadd.f32 %v2337_v49, %v1998_v50  ;;  %v2551_v30 = vpop.f32.mrb[19].mxu1 }
0x14ab   : > { %v2003_v52 = vmul.f32 0.044715, %v1999_v51  ;;  %v2002_v58 = vmul.f32 0.5, %v1999_v51 }
0x14ad   : > { %v2004_v53 = vmul.f32 %v2003_v52, %v1999_v51 }
0x14af   : > { %v2005_v54 = vmul.f32 %v2004_v53, %v1999_v51 }
0x14b1   : > { %v2006_v55 = vadd.f32 %v2005_v54, %v1999_v51 }
0x14b3   : > { %v2007_v56 = vmul.f32 0.7978846, %v2006_v55 }
0x14b5   : > { %2691 = vtanh.f32 %v2007_v56 }
0x14bf   : > { %v2692_v57 = vpop.eup %2691 }
0x14c0   : > { %v2009_v59 = vadd.f32 1.0, %v2692_v57 }
0x14c2   : > { %v2010_v60 = vmul.f32 %v2009_v59, %v2002_v58 }
0x14c4   : > { %2569 = vmatmul.mubr.msk.f32.vlgmr.msra.gmra.mrb[10].mxu0 %vm1270_vm4, %v2010_v60 }
0x1597   : > { %v2097_v62 = vpop.f32.mrb[10].mxu0 }
0x1598   : > { %v2098_v63 = vadd.f32 %v2348_v61, %v2097_v62  ;;  %v2570_v0 = vpop.f32.mrb[11].mxu0 }
0x159a   : > { %v2101_v1 = vadd.f32 %v2098_v63, %v1915_v37 }
0x159c   : > { %v2106_v2 = vsel %vm589_vm0, %v2101_v1, 0.0 }
0x159d   : > { %2107 = vadd.xlane.f32.xlu0 %v2106_v2 }
0x162a   : > { %v2108_v3 = vpop.xlane.xlu0 %2107 }
0x162b   : > { %v2109_v4 = vmul.f32 0.03125, %v2108_v3 }
0x162d   : > { %v2110_v5 = vsub.f32 %v2101_v1, %v2109_v4 }
0x162f   : > { %v2111_v6 = vmul.f32 %v2110_v5, %v2110_v5 }
0x1631   : > { %v2112_v7 = vsel %vm589_vm0, %v2111_v6, 0.0 }
0x1632   : > { %2113 = vadd.xlane.f32.xlu0 %v2112_v7 }
0x16bf   : > { %v2114_v16 = vpop.xlane.xlu0 %2113 }
0x16c0   : > { %v2115_v17 = vmul.f32 0.03125, %v2114_v16 }
0x16c2   : > { %v2116_v18 = vadd.f32 1e-12, %v2115_v17 }
0x16c4   : > { %2693 = vrsqrt.f32 %v2116_v18 }
0x16ce   : > { %v2694_v19 = vpop.eup %2693 }
0x16cf   : > { %v2118_v20 = vmul.f32 %v2694_v19, %v2110_v5 }
0x16d1   : > { %v2125_v22 = vmul.f32 %v2352_v10, %v2118_v20 }
0x16d3   : > { %v2132_v24 = vadd.f32 %v2353_v21, %v2125_v22 }
0x16d5   : > { %2580 = vmatmul.mubr.msk.f32.vlgmr.msra.gmra.mrb[20].mxu1 %vm589_vm0, %v2132_v24 }
0x17a8   : > { %v2213_v25 = vpop.f32.mrb[20].mxu1 }
0x17a9   : > { %v2214_v26 = vadd.f32 %v2354_v23, %v2213_v25  ;;  %v2581_v27 = vpop.f32.mrb[21].mxu1 }
0x17ab   : > { %2217 = vst [vmem:[%s584_s21] sm:$0xff] %v2214_v26 }
0x17ac PF: > { %s28_s27 = sadd.s32 1, %s2701_s27  }
0x17ad   : > { %p25_p4 = scmp.ge.s32.totalorder %s28_s27, 4  }
0x17af   :  { %27 = sbr.rel (!%p25_p4) target bundleno = 4 (0x4), region = 137 }

</bundles_post_ra>
